<compile_context>
chip_gen: v5e
topology: v5e:2x2
jax: 0.10.0
libtpu: 0.0.40
codegen_flags: <defaults>
</compile_context>

<pallas_src>
import math

import jax
import jax.numpy as jnp
import numpy as np
from jax.experimental import pallas as pl
from jax.experimental.pallas import tpu as pltpu

# ---------------- static config (small shapes consistent with TFBlock) -----
B = 2            # batch
C1 = 4           # input channels (c1 != c2 -> Conv branch active)
C2 = 32          # embed dim / output channels (c2)
NH = 4           # num_heads
NL = 2           # num_layers
W_SP = 8         # spatial w
H_SP = 8         # spatial h
S = W_SP * H_SP  # sequence length = w*h
DH = C2 // NH    # head dim
LN_EPS = 1e-5
BN_EPS = 1e-5
_HIGH = jax.lax.Precision.HIGHEST   # used only OUTSIDE the kernel (prep / reference)


def _layernorm_t(x, g, b):
    """LayerNorm of a feature-major (C2, S) tile over the feature axis."""
    mu = jnp.mean(x, axis=0, keepdims=True)
    xc = x - mu
    var = jnp.mean(xc * xc, axis=0, keepdims=True)
    return xc * jax.lax.rsqrt(var + LN_EPS) * g + b


def tfblock_kernel(x_ref, stemw_ref, stemb_ref, wqkv_ref, wom_ref, vec_ref, o_ref):
    bf16 = jnp.bfloat16
    f32 = jnp.float32

    # ---- stem: 1x1 conv (BN folded) + hardswish, then token Linear residual.
    # Everything is feature-major (C2, S): lane-dense activations, natural
    # MXU orientation, and the final NCHW store is free.
    x = x_ref[0].astype(bf16)                               # (C1, S)
    wconv_t = stemw_ref[0][:, 0:C1]                         # (C2, C1) bf16
    wlin_t = stemw_ref[1]                                   # (C2, C2) bf16
    y = jnp.dot(wconv_t, x, preferred_element_type=f32) + stemb_ref[:, 0:1]
    y = y * jnp.clip(y + 3.0, 0.0, 6.0) * (1.0 / 6.0)       # hardswish
    h0 = (y + jnp.dot(wlin_t, y.astype(bf16), preferred_element_type=f32)
          + stemb_ref[:, 1:2])                              # (C2, S)

    # ---- transformer layers: fori_loop bounds live ranges, weights read per
    # layer via dynamic leading-axis ref indexing.
    def layer(l, h):
        wqkv_t = wqkv_ref[l]                                # (3*C2, C2) bf16
        wom_t = wom_ref[l]                                  # (2, C2, C2) bf16
        vec = vec_ref[l]                                    # (3*C2, 8)  f32
        bqkv = vec[:, 0:1]                                  # (3*C2, 1)
        bo = vec[0:C2, 1:2]
        g1, b1 = vec[0:C2, 2:3], vec[0:C2, 3:4]
        g2, b2 = vec[0:C2, 4:5], vec[0:C2, 5:6]

        ln1 = _layernorm_t(h, g1, b1)                                     # (C2, S)
        qkv = jnp.dot(wqkv_t, ln1.astype(bf16),
                      preferred_element_type=f32) + bqkv                  # (3*C2, S)
        # rows are already (part, head, dh)-major -> free reshape, no lane slices
        qkv_h = qkv.reshape(3 * NH, DH, S)                                # (12, DH, S)
        q4 = jnp.swapaxes(qkv_h[0:NH], 1, 2).astype(bf16)                 # (NH, S, DH)
        k4 = qkv_h[NH:2 * NH].astype(bf16)                                # (NH, DH, S)
        v4 = jnp.swapaxes(qkv_h[2 * NH:3 * NH], 1, 2).astype(bf16)        # (NH, S, DH)

        # all heads batched in one matmul pair; 1/sqrt(dh) already folded into q
        sc = jax.lax.dot_general(q4, k4, (((2,), (1,)), ((0,), (0,))),
                                 preferred_element_type=f32)              # (NH, S, S)
        sc = sc - jnp.max(sc, axis=-1, keepdims=True)
        p = jnp.exp(sc)
        attn = p * pl.reciprocal(jnp.sum(p, axis=-1, keepdims=True), approx=True)
        o4 = jax.lax.dot_general(attn.astype(bf16), v4,
                                 (((2,), (1,)), ((0,), (0,))),
                                 preferred_element_type=f32)              # (NH, S, DH)
        # reassemble heads (small batched transpose + free reshape), then ONE
        # merged out-projection matmul
        o_cat = jnp.swapaxes(o4, 1, 2).reshape(C2, S).astype(bf16)        # (C2, S)
        ma = h + bo + jnp.dot(wom_t[0], o_cat, preferred_element_type=f32)

        ln2 = _layernorm_t(ma, g2, b2)
        return jnp.dot(wom_t[1], ln2.astype(bf16),
                       preferred_element_type=f32) + ln2

    h = jax.lax.fori_loop(0, NL, layer, h0)

    # output is already the NCHW flattening (C2, S): straight lane-dense store
    o_ref[0] = h


def init_params(key):
    """Raw (PyTorch-like) parameters, used by the pure-JAX reference."""
    ks = jax.random.split(key, 15)
    s = 0.1
    # 1x1 conv weight (PyTorch (C2,C1,1,1)) stored pre-transposed as (C1, C2)
    wconv = s * jax.random.normal(ks[0], (C1, C2), jnp.float32)
    # BatchNorm2d(C2), eval mode, folded into scale/bias
    gamma = 1.0 + 0.1 * jax.random.normal(ks[1], (C2,), jnp.float32)
    beta = 0.1 * jax.random.normal(ks[2], (C2,), jnp.float32)
    rmean = 0.1 * jax.random.normal(ks[3], (C2,), jnp.float32)
    rvar = jnp.abs(jax.random.normal(ks[4], (C2,), jnp.float32)) + 0.5
    inv = gamma / jnp.sqrt(rvar + BN_EPS)
    bns = inv.reshape(1, C2)
    bnb = (beta - rmean * inv).reshape(1, C2)
    # Linear(c2, c2) with bias (pre-transposed for x @ W)
    wlin = s * jax.random.normal(ks[5], (C2, C2), jnp.float32)
    blin = s * jax.random.normal(ks[6], (1, C2), jnp.float32)
    # stacked per-layer TFLayer params (all Linear weights pre-transposed)
    wqkv = s * jax.random.normal(ks[7], (NL, 3, C2, C2), jnp.float32)
    winp = s * jax.random.normal(ks[8], (NL, 3, C2, C2), jnp.float32)
    binp = s * jax.random.normal(ks[9], (NL, 3, C2), jnp.float32)
    wout = s * jax.random.normal(ks[10], (NL, C2, C2), jnp.float32)
    bout = s * jax.random.normal(ks[11], (NL, C2), jnp.float32)
    lng = 1.0 + 0.1 * jax.random.normal(ks[12], (NL, 2, C2), jnp.float32)
    lnb = 0.1 * jax.random.normal(ks[13], (NL, 2, C2), jnp.float32)
    wfc = s * jax.random.normal(ks[14], (NL, 2, C2, C2), jnp.float32)
    return (wconv, bns, bnb, wlin, blin, wqkv, winp, binp, wout, bout, lng, lnb, wfc)


def prepare_params(params):
    """One-time offline packing / algebraic fusion into feature-major weights."""
    (wconv, bns, bnb, wlin, blin, wqkv, winp, binp, wout, bout,
     lng, lnb, wfc) = params
    scale = 1.0 / math.sqrt(DH)

    def mm(a, b):
        return jnp.einsum('lij,ljk->lik', a, b, precision=_HIGH)

    # fuse q/k/v Linear with MHA in_proj (exact: no nonlinearity between them);
    # fold the 1/sqrt(dh) softmax scale into the q weight (and bias below)
    wq = mm(wqkv[:, 0], winp[:, 0]) * scale
    wk = mm(wqkv[:, 1], winp[:, 1])
    wv = mm(wqkv[:, 2], winp[:, 2])
    w_qkv_t = jnp.concatenate([wq, wk, wv], axis=-1)                  # (NL, C2, 3C2)
    w_qkv_t = jnp.swapaxes(w_qkv_t, -1, -2).astype(jnp.bfloat16)      # (NL, 3C2, C2)
    # MHA out_proj and fused fc1@fc2, transposed for feature-major activations
    w_out_t = jnp.swapaxes(wout, -1, -2)
    w_mlp_t = jnp.swapaxes(mm(wfc[:, 0], wfc[:, 1]), -1, -2)
    w_om_t = jnp.stack([w_out_t, w_mlp_t], axis=1).astype(jnp.bfloat16)  # (NL,2,C2,C2)

    # stem: BN scale folded into the conv weight; conv weight zero-padded so it
    # shares one (2, C2, C2) array with the token-Linear weight
    conv_t = jnp.swapaxes(wconv * bns, 0, 1)                          # (C2, C1)
    conv_pad = jnp.zeros((C2, C2), jnp.float32).at[:, 0:C1].set(conv_t)
    stem_w = jnp.stack([conv_pad, jnp.swapaxes(wlin, 0, 1)], axis=0)
    stem_w = stem_w.astype(jnp.bfloat16)                              # (2, C2, C2)
    stem_b = jnp.stack([bnb.reshape(C2), blin.reshape(C2)], axis=-1)  # (C2, 2)

    # per-layer bias / LN params packed as feature-major columns:
    #   col 0: fused qkv bias (q bias pre-scaled), col 1: out_proj bias,
    #   cols 2/3: ln1 gamma/beta, cols 4/5: ln2 gamma/beta, cols 6/7: pad
    pad = jnp.zeros((NL, 2 * C2), jnp.float32)
    col0 = jnp.concatenate([binp[:, 0] * scale, binp[:, 1], binp[:, 2]], axis=-1)

    def c(v):
        return jnp.concatenate([v, pad], axis=-1)                     # (NL, 3C2)

    vecs = jnp.stack([col0, c(bout), c(lng[:, 0]), c(lnb[:, 0]),
                      c(lng[:, 1]), c(lnb[:, 1]),
                      jnp.zeros_like(col0), jnp.zeros_like(col0)],
                     axis=-1)                                         # (NL, 3C2, 8)
    return stem_w, stem_b, w_qkv_t, w_om_t, vecs


@jax.jit
def tfblock_forward(x_nchw, kparams):
    stem_w, stem_b, w_qkv_t, w_om_t, vecs = kparams
    b, c1, w, h = x_nchw.shape
    assert (b, c1, w, h) == (B, C1, W_SP, H_SP)
    x_flat = x_nchw.reshape(B, C1, S)            # free reshape of NCHW

    out = pl.pallas_call(
        tfblock_kernel,
        out_shape=jax.ShapeDtypeStruct((B, C2, S), jnp.float32),
        grid_spec=pltpu.PrefetchScalarGridSpec(
            num_scalar_prefetch=0,
            grid=(B,),                           # batch -> parallel grid axis
            in_specs=[
                pl.BlockSpec((1, C1, S), lambda b: (b, 0, 0)),          # x
                pl.BlockSpec((2, C2, C2), lambda b: (0, 0, 0)),         # stem_w
                pl.BlockSpec((C2, 2), lambda b: (0, 0)),                # stem_b
                pl.BlockSpec((NL, 3 * C2, C2), lambda b: (0, 0, 0)),    # w_qkv_t
                pl.BlockSpec((NL, 2, C2, C2), lambda b: (0, 0, 0, 0)),  # w_om_t
                pl.BlockSpec((NL, 3 * C2, 8), lambda b: (0, 0, 0)),     # vecs
            ],
            out_specs=pl.BlockSpec((1, C2, S), lambda b: (b, 0, 0)),
        ),
        compiler_params=pltpu.CompilerParams(dimension_semantics=("parallel",)),
    )(x_flat, stem_w, stem_b, w_qkv_t, w_om_t, vecs)
    return out.reshape(B, C2, W_SP, H_SP)        # free reshape back to NCHW


def reference(x_nchw, params):
    """Pure-JAX reference mirroring the PyTorch forward (unfused params)."""
    wconv, bns, bnb, wlin, blin, wqkv, winp, binp, wout, bout, lng, lnb, wfc = params
    b, c1, w, h = x_nchw.shape
    x = jnp.transpose(x_nchw.reshape(b, c1, w * h), (0, 2, 1))         # (B,S,C1)

    def mm(a, w_):
        return jnp.einsum('bsc,cd->bsd', a, w_, precision=_HIGH)

    y = mm(x, wconv)
    y = y * bns + bnb
    y = y * jnp.clip(y + 3.0, 0.0, 6.0) / 6.0
    hcur = y + (mm(y, wlin) + blin)

    def ln(z, g, bb):
        mu = z.mean(-1, keepdims=True)
        var = ((z - mu) ** 2).mean(-1, keepdims=True)
        return (z - mu) / jnp.sqrt(var + LN_EPS) * g + bb

    for l in range(NL):
        x1 = ln(hcur, lng[l, 0], lnb[l, 0])
        q = mm(x1, wqkv[l, 0])
        k = mm(x1, wqkv[l, 1])
        v = mm(x1, wqkv[l, 2])
        qp = mm(q, winp[l, 0]) + binp[l, 0]
        kp = mm(k, winp[l, 1]) + binp[l, 1]
        vp = mm(v, winp[l, 2]) + binp[l, 2]
        qh = qp.reshape(B, S, NH, DH)
        kh = kp.reshape(B, S, NH, DH)
        vh = vp.reshape(B, S, NH, DH)
        sc = jnp.einsum('bqhd,bkhd->bhqk', qh, kh, precision=_HIGH) / math.sqrt(DH)
        attn = jax.nn.softmax(sc, axis=-1)
        o = jnp.einsum('bhqk,bkhd->bqhd', attn, vh, precision=_HIGH).reshape(B, S, C2)
        ma = mm(o, wout[l]) + bout[l] + hcur
        x2 = ln(ma, lng[l, 1], lnb[l, 1])
        hcur = mm(mm(x2, wfc[l, 0]), wfc[l, 1]) + x2
    return jnp.transpose(hcur, (0, 2, 1)).reshape(B, C2, W_SP, H_SP)


if __name__ == "__main__":
    key = jax.random.PRNGKey(0)
    kx, kp = jax.random.split(key)
    x = jax.random.normal(kx, (B, C1, W_SP, H_SP), jnp.float32)
    params = init_params(kp)
    kparams = prepare_params(params)             # one-time offline weight prep

    out = jax.block_until_ready(tfblock_forward(x, kparams))
    assert out.shape == (B, C2, W_SP, H_SP)

    ref = jax.block_until_ready(reference(x, params))
    # bf16 matmul operands (f32 accumulate) + approx softmax reciprocal vs a
    # HIGHEST-precision f32 reference -> slightly looser tolerance than f32.
    np.testing.assert_allclose(np.asarray(out), np.asarray(ref), rtol=3e-2, atol=3e-2)

    print("KERNEL_OK")
</pallas_src>

<mosaic_0001>
module attributes {stable_mosaic.version = 11 : i64} {
  func.func @tfblock_kernel(%arg0: i32, %arg1: memref<1x4x64xf32, #tpu.memory_space<vmem>>, %arg2: memref<2x32x32xbf16, #tpu.memory_space<vmem>>, %arg3: memref<32x2xf32, #tpu.memory_space<vmem>>, %arg4: memref<2x96x32xbf16, #tpu.memory_space<vmem>>, %arg5: memref<2x2x32x32xbf16, #tpu.memory_space<vmem>>, %arg6: memref<2x96x8xf32, #tpu.memory_space<vmem>>, %arg7: memref<1x32x64xf32, #tpu.memory_space<vmem>>) attributes {dimension_semantics = [#tpu.dimension_semantics<parallel>], iteration_bounds = array<i64: 2>, scalar_prefetch = 0 : i64, scratch_operands = 0 : i64, tpu.core_type = #tpu.core_type<tc>, window_params = [{transform_indices = @transform_0, window_bounds = array<i64: 1, 4, 64>}, {pipeline_mode = #tpu.pipeline_mode<synchronous>, transform_indices = @transform_1, window_bounds = array<i64: 2, 32, 32>}, {pipeline_mode = #tpu.pipeline_mode<synchronous>, transform_indices = @transform_2, window_bounds = array<i64: 32, 2>}, {pipeline_mode = #tpu.pipeline_mode<synchronous>, transform_indices = @transform_3, window_bounds = array<i64: 2, 96, 32>}, {pipeline_mode = #tpu.pipeline_mode<synchronous>, transform_indices = @transform_4, window_bounds = array<i64: 2, 2, 32, 32>}, {pipeline_mode = #tpu.pipeline_mode<synchronous>, transform_indices = @transform_5, window_bounds = array<i64: 2, 96, 8>}, {transform_indices = @transform_6, window_bounds = array<i64: 1, 32, 64>}]} {
    %c0 = arith.constant 0 : index
    %c0_0 = arith.constant 0 : index
    %c0_1 = arith.constant 0 : index
    %0 = vector.load %arg1[%c0, %c0_0, %c0_1] : memref<1x4x64xf32, #tpu.memory_space<vmem>>, vector<1x4x64xf32>
    %1 = vector.shape_cast %0 : vector<1x4x64xf32> to vector<4x64xf32>
    %2 = arith.truncf %1 : vector<4x64xf32> to vector<4x64xbf16>
    %c0_2 = arith.constant 0 : index
    %c0_3 = arith.constant 0 : index
    %c0_4 = arith.constant 0 : index
    %3 = vector.load %arg2[%c0_2, %c0_3, %c0_4] : memref<2x32x32xbf16, #tpu.memory_space<vmem>>, vector<1x32x32xbf16>
    %4 = vector.shape_cast %3 : vector<1x32x32xbf16> to vector<32x32xbf16>
    %5 = vector.extract_strided_slice %4 {offsets = [0, 0], sizes = [32, 4], strides = [1, 1]} : vector<32x32xbf16> to vector<32x4xbf16>
    %c1 = arith.constant 1 : index
    %c0_5 = arith.constant 0 : index
    %c0_6 = arith.constant 0 : index
    %6 = vector.load %arg2[%c1, %c0_5, %c0_6] : memref<2x32x32xbf16, #tpu.memory_space<vmem>>, vector<1x32x32xbf16>
    %7 = vector.shape_cast %6 : vector<1x32x32xbf16> to vector<32x32xbf16>
    %cst = arith.constant dense<0.000000e+00> : vector<32x64xf32>
    %8 = tpu.matmul %5, %2, %cst {dimension_numbers = #tpu.dot_dimension_numbers<[1], [0], [0], [1], [0, 0, 1, 1], [], []>} : vector<32x4xbf16>, vector<4x64xbf16>, vector<32x64xf32> -> vector<32x64xf32>
    %c0_7 = arith.constant 0 : index
    %c0_8 = arith.constant 0 : index
    %9 = vector.load %arg3[%c0_7, %c0_8] : memref<32x2xf32, #tpu.memory_space<vmem>>, vector<32x1xf32>
    %10 = vector.broadcast %9 : vector<32x1xf32> to vector<32x64xf32>
    %11 = arith.addf %8, %10 : vector<32x64xf32>
    %cst_9 = arith.constant 3.000000e+00 : f32
    %12 = vector.broadcast %cst_9 : f32 to vector<32x64xf32>
    %13 = arith.addf %11, %12 : vector<32x64xf32>
    %cst_10 = arith.constant 0.000000e+00 : f32
    %cst_11 = arith.constant 6.000000e+00 : f32
    %14 = vector.broadcast %cst_10 : f32 to vector<32x64xf32>
    %15 = arith.maximumf %14, %13 : vector<32x64xf32>
    %16 = vector.broadcast %cst_11 : f32 to vector<32x64xf32>
    %17 = arith.minimumf %16, %15 : vector<32x64xf32>
    %18 = arith.mulf %11, %17 : vector<32x64xf32>
    %cst_12 = arith.constant 0.166666672 : f32
    %19 = vector.broadcast %cst_12 : f32 to vector<32x64xf32>
    %20 = arith.mulf %18, %19 : vector<32x64xf32>
    %21 = arith.truncf %20 : vector<32x64xf32> to vector<32x64xbf16>
    %cst_13 = arith.constant dense<0.000000e+00> : vector<32x64xf32>
    %22 = tpu.matmul %7, %21, %cst_13 {dimension_numbers = #tpu.dot_dimension_numbers<[1], [0], [0], [1], [0, 0, 1, 1], [], []>} : vector<32x32xbf16>, vector<32x64xbf16>, vector<32x64xf32> -> vector<32x64xf32>
    %23 = arith.addf %20, %22 : vector<32x64xf32>
    %c0_14 = arith.constant 0 : index
    %c1_15 = arith.constant 1 : index
    %24 = vector.load %arg3[%c0_14, %c1_15] : memref<32x2xf32, #tpu.memory_space<vmem>>, vector<32x1xf32>
    %25 = vector.broadcast %24 : vector<32x1xf32> to vector<32x64xf32>
    %26 = arith.addf %23, %25 : vector<32x64xf32>
    %c0_i32 = arith.constant 0 : i32
    %c2_i32 = arith.constant 2 : i32
    %27 = arith.addi %c0_i32, %c2_i32 : i32
    %c1_i32 = arith.constant 1 : i32
    %28 = scf.for %arg8 = %c0_i32 to %27 step %c1_i32 iter_args(%arg9 = %26) -> (vector<32x64xf32>)  : i32 {
      %32 = arith.index_cast %arg8 : i32 to index
      %c0_20 = arith.constant 0 : index
      %c0_21 = arith.constant 0 : index
      %33 = vector.load %arg4[%32, %c0_20, %c0_21] : memref<2x96x32xbf16, #tpu.memory_space<vmem>>, vector<1x96x32xbf16>
      %34 = vector.shape_cast %33 : vector<1x96x32xbf16> to vector<96x32xbf16>
      %35 = arith.index_cast %arg8 : i32 to index
      %c0_22 = arith.constant 0 : index
      %c0_23 = arith.constant 0 : index
      %c0_24 = arith.constant 0 : index
      %36 = vector.load %arg5[%35, %c0_22, %c0_23, %c0_24] : memref<2x2x32x32xbf16, #tpu.memory_space<vmem>>, vector<1x2x32x32xbf16>
      %37 = vector.shape_cast %36 : vector<1x2x32x32xbf16> to vector<2x32x32xbf16>
      %38 = arith.index_cast %arg8 : i32 to index
      %c0_25 = arith.constant 0 : index
      %c0_26 = arith.constant 0 : index
      %39 = vector.load %arg6[%38, %c0_25, %c0_26] : memref<2x96x8xf32, #tpu.memory_space<vmem>>, vector<1x96x8xf32>
      %40 = vector.shape_cast %39 : vector<1x96x8xf32> to vector<96x8xf32>
      %41 = vector.extract_strided_slice %40 {offsets = [0, 0], sizes = [96, 1], strides = [1, 1]} : vector<96x8xf32> to vector<96x1xf32>
      %42 = vector.extract_strided_slice %40 {offsets = [0, 1], sizes = [32, 1], strides = [1, 1]} : vector<96x8xf32> to vector<32x1xf32>
      %43 = vector.extract_strided_slice %40 {offsets = [0, 2], sizes = [32, 1], strides = [1, 1]} : vector<96x8xf32> to vector<32x1xf32>
      %44 = vector.extract_strided_slice %40 {offsets = [0, 3], sizes = [32, 1], strides = [1, 1]} : vector<96x8xf32> to vector<32x1xf32>
      %45 = vector.extract_strided_slice %40 {offsets = [0, 4], sizes = [32, 1], strides = [1, 1]} : vector<96x8xf32> to vector<32x1xf32>
      %46 = vector.extract_strided_slice %40 {offsets = [0, 5], sizes = [32, 1], strides = [1, 1]} : vector<96x8xf32> to vector<32x1xf32>
      %cst_27 = arith.constant dense<0.000000e+00> : vector<64xf32>
      %47 = vector.multi_reduction <add>, %arg9, %cst_27 [0] : vector<32x64xf32> to vector<64xf32>
      %48 = vector.shape_cast %47 : vector<64xf32> to vector<1x64xf32>
      %cst_28 = arith.constant 3.200000e+01 : f32
      %49 = vector.broadcast %cst_28 : f32 to vector<1x64xf32>
      %50 = arith.divf %48, %49 : vector<1x64xf32>
      %51 = vector.broadcast %50 : vector<1x64xf32> to vector<32x64xf32>
      %52 = arith.subf %arg9, %51 : vector<32x64xf32>
      %53 = arith.mulf %52, %52 : vector<32x64xf32>
      %cst_29 = arith.constant dense<0.000000e+00> : vector<64xf32>
      %54 = vector.multi_reduction <add>, %53, %cst_29 [0] : vector<32x64xf32> to vector<64xf32>
      %55 = vector.shape_cast %54 : vector<64xf32> to vector<1x64xf32>
      %cst_30 = arith.constant 3.200000e+01 : f32
      %56 = vector.broadcast %cst_30 : f32 to vector<1x64xf32>
      %57 = arith.divf %55, %56 : vector<1x64xf32>
      %cst_31 = arith.constant 9.99999974E-6 : f32
      %58 = vector.broadcast %cst_31 : f32 to vector<1x64xf32>
      %59 = arith.addf %57, %58 : vector<1x64xf32>
      %60 = math.rsqrt %59 : vector<1x64xf32>
      %61 = vector.broadcast %60 : vector<1x64xf32> to vector<32x64xf32>
      %62 = arith.mulf %52, %61 : vector<32x64xf32>
      %63 = vector.broadcast %43 : vector<32x1xf32> to vector<32x64xf32>
      %64 = arith.mulf %62, %63 : vector<32x64xf32>
      %65 = vector.broadcast %44 : vector<32x1xf32> to vector<32x64xf32>
      %66 = arith.addf %64, %65 : vector<32x64xf32>
      %67 = arith.truncf %66 : vector<32x64xf32> to vector<32x64xbf16>
      %cst_32 = arith.constant dense<0.000000e+00> : vector<96x64xf32>
      %68 = tpu.matmul %34, %67, %cst_32 {dimension_numbers = #tpu.dot_dimension_numbers<[1], [0], [0], [1], [0, 0, 1, 1], [], []>} : vector<96x32xbf16>, vector<32x64xbf16>, vector<96x64xf32> -> vector<96x64xf32>
      %69 = vector.broadcast %41 : vector<96x1xf32> to vector<96x64xf32>
      %70 = arith.addf %68, %69 : vector<96x64xf32>
      %71 = vector.shape_cast %70 : vector<96x64xf32> to vector<12x8x64xf32>
      %72 = vector.extract_strided_slice %71 {offsets = [0, 0, 0], sizes = [4, 8, 64], strides = [1, 1, 1]} : vector<12x8x64xf32> to vector<4x8x64xf32>
      %73 = tpu.transpose %72, [0, 2, 1] : vector<4x8x64xf32> -> vector<4x64x8xf32>
      %74 = arith.truncf %73 : vector<4x64x8xf32> to vector<4x64x8xbf16>
      %75 = vector.extract_strided_slice %71 {offsets = [4, 0, 0], sizes = [4, 8, 64], strides = [1, 1, 1]} : vector<12x8x64xf32> to vector<4x8x64xf32>
      %76 = arith.truncf %75 : vector<4x8x64xf32> to vector<4x8x64xbf16>
      %77 = vector.extract_strided_slice %71 {offsets = [8, 0, 0], sizes = [4, 8, 64], strides = [1, 1, 1]} : vector<12x8x64xf32> to vector<4x8x64xf32>
      %78 = tpu.transpose %77, [0, 2, 1] : vector<4x8x64xf32> -> vector<4x64x8xf32>
      %79 = arith.truncf %78 : vector<4x64x8xf32> to vector<4x64x8xbf16>
      %cst_33 = arith.constant dense<0.000000e+00> : vector<4x64x64xf32>
      %80 = tpu.matmul %74, %76, %cst_33 {dimension_numbers = #tpu.dot_dimension_numbers<[2], [1], [1], [2], [0, 0, 0, 1, 1, 2], [0], [0]>} : vector<4x64x8xbf16>, vector<4x8x64xbf16>, vector<4x64x64xf32> -> vector<4x64x64xf32>
      %cst_34 = arith.constant dense<0xFF800000> : vector<4x64xf32>
      %81 = vector.multi_reduction <maximumf>, %80, %cst_34 [2] : vector<4x64x64xf32> to vector<4x64xf32>
      %82 = vector.shape_cast %81 : vector<4x64xf32> to vector<4x64x1xf32>
      %83 = vector.broadcast %82 : vector<4x64x1xf32> to vector<4x64x64xf32>
      %84 = arith.subf %80, %83 : vector<4x64x64xf32>
      %85 = math.exp %84 : vector<4x64x64xf32>
      %cst_35 = arith.constant dense<0.000000e+00> : vector<4x64xf32>
      %86 = vector.multi_reduction <add>, %85, %cst_35 [2] : vector<4x64x64xf32> to vector<4x64xf32>
      %87 = vector.shape_cast %86 : vector<4x64xf32> to vector<4x64x1xf32>
      %88 = tpu.reciprocal %87 {approx = true} : vector<4x64x1xf32> -> vector<4x64x1xf32>
      %89 = vector.broadcast %88 : vector<4x64x1xf32> to vector<4x64x64xf32>
      %90 = arith.mulf %85, %89 : vector<4x64x64xf32>
      %91 = arith.truncf %90 : vector<4x64x64xf32> to vector<4x64x64xbf16>
      %cst_36 = arith.constant dense<0.000000e+00> : vector<4x64x8xf32>
      %92 = tpu.matmul %91, %79, %cst_36 {dimension_numbers = #tpu.dot_dimension_numbers<[2], [1], [1], [2], [0, 0, 0, 1, 1, 2], [0], [0]>} : vector<4x64x64xbf16>, vector<4x64x8xbf16>, vector<4x64x8xf32> -> vector<4x64x8xf32>
      %93 = tpu.transpose %92, [0, 2, 1] : vector<4x64x8xf32> -> vector<4x8x64xf32>
      %94 = vector.shape_cast %93 : vector<4x8x64xf32> to vector<32x64xf32>
      %95 = arith.truncf %94 : vector<32x64xf32> to vector<32x64xbf16>
      %96 = vector.broadcast %42 : vector<32x1xf32> to vector<32x64xf32>
      %97 = arith.addf %arg9, %96 : vector<32x64xf32>
      %98 = vector.extract_strided_slice %37 {offsets = [0, 0, 0], sizes = [1, 32, 32], strides = [1, 1, 1]} : vector<2x32x32xbf16> to vector<1x32x32xbf16>
      %99 = vector.shape_cast %98 : vector<1x32x32xbf16> to vector<32x32xbf16>
      %cst_37 = arith.constant dense<0.000000e+00> : vector<32x64xf32>
      %100 = tpu.matmul %99, %95, %cst_37 {dimension_numbers = #tpu.dot_dimension_numbers<[1], [0], [0], [1], [0, 0, 1, 1], [], []>} : vector<32x32xbf16>, vector<32x64xbf16>, vector<32x64xf32> -> vector<32x64xf32>
      %101 = arith.addf %97, %100 : vector<32x64xf32>
      %cst_38 = arith.constant dense<0.000000e+00> : vector<64xf32>
      %102 = vector.multi_reduction <add>, %101, %cst_38 [0] : vector<32x64xf32> to vector<64xf32>
      %103 = vector.shape_cast %102 : vector<64xf32> to vector<1x64xf32>
      %cst_39 = arith.constant 3.200000e+01 : f32
      %104 = vector.broadcast %cst_39 : f32 to vector<1x64xf32>
      %105 = arith.divf %103, %104 : vector<1x64xf32>
      %106 = vector.broadcast %105 : vector<1x64xf32> to vector<32x64xf32>
      %107 = arith.subf %101, %106 : vector<32x64xf32>
      %108 = arith.mulf %107, %107 : vector<32x64xf32>
      %cst_40 = arith.constant dense<0.000000e+00> : vector<64xf32>
      %109 = vector.multi_reduction <add>, %108, %cst_40 [0] : vector<32x64xf32> to vector<64xf32>
      %110 = vector.shape_cast %109 : vector<64xf32> to vector<1x64xf32>
      %cst_41 = arith.constant 3.200000e+01 : f32
      %111 = vector.broadcast %cst_41 : f32 to vector<1x64xf32>
      %112 = arith.divf %110, %111 : vector<1x64xf32>
      %cst_42 = arith.constant 9.99999974E-6 : f32
      %113 = vector.broadcast %cst_42 : f32 to vector<1x64xf32>
      %114 = arith.addf %112, %113 : vector<1x64xf32>
      %115 = math.rsqrt %114 : vector<1x64xf32>
      %116 = vector.broadcast %115 : vector<1x64xf32> to vector<32x64xf32>
      %117 = arith.mulf %107, %116 : vector<32x64xf32>
      %118 = vector.broadcast %45 : vector<32x1xf32> to vector<32x64xf32>
      %119 = arith.mulf %117, %118 : vector<32x64xf32>
      %120 = vector.broadcast %46 : vector<32x1xf32> to vector<32x64xf32>
      %121 = arith.addf %119, %120 : vector<32x64xf32>
      %122 = vector.extract_strided_slice %37 {offsets = [1, 0, 0], sizes = [1, 32, 32], strides = [1, 1, 1]} : vector<2x32x32xbf16> to vector<1x32x32xbf16>
      %123 = vector.shape_cast %122 : vector<1x32x32xbf16> to vector<32x32xbf16>
      %124 = arith.truncf %121 : vector<32x64xf32> to vector<32x64xbf16>
      %cst_43 = arith.constant dense<0.000000e+00> : vector<32x64xf32>
      %125 = tpu.matmul %123, %124, %cst_43 {dimension_numbers = #tpu.dot_dimension_numbers<[1], [0], [0], [1], [0, 0, 1, 1], [], []>} : vector<32x32xbf16>, vector<32x64xbf16>, vector<32x64xf32> -> vector<32x64xf32>
      %126 = arith.addf %125, %121 : vector<32x64xf32>
      scf.yield %126 : vector<32x64xf32>
    }
    %c2_i32_16 = arith.constant 2 : i32
    %c0_17 = arith.constant 0 : index
    %c0_18 = arith.constant 0 : index
    %c0_19 = arith.constant 0 : index
    %29 = vector.load %arg7[%c0_17, %c0_18, %c0_19] : memref<1x32x64xf32, #tpu.memory_space<vmem>>, vector<1x32x64xf32>
    %30 = vector.shape_cast %29 : vector<1x32x64xf32> to vector<32x64xf32>
    %31 = vector.shape_cast %28 : vector<32x64xf32> to vector<1x32x64xf32>
    tpu.vector_store %arg7[%c0_17, %c0_18, %c0_19], %31 {strides = array<i32>} : memref<1x32x64xf32, #tpu.memory_space<vmem>>, vector<1x32x64xf32>,
    return
  }
  func.func @transform_0(%arg0: i32) -> (i32, i32, i32) {
    %c0_i32 = arith.constant 0 : i32
    %c0_i32_0 = arith.constant 0 : i32
    %c0_i32_1 = arith.constant 0 : i32
    return %arg0, %c0_i32, %c0_i32_0 : i32, i32, i32
  }
  func.func @transform_1(%arg0: i32) -> (i32, i32, i32) {
    %c0_i32 = arith.constant 0 : i32
    %c0_i32_0 = arith.constant 0 : i32
    %c0_i32_1 = arith.constant 0 : i32
    %c0_i32_2 = arith.constant 0 : i32
    return %c0_i32, %c0_i32_0, %c0_i32_1 : i32, i32, i32
  }
  func.func @transform_2(%arg0: i32) -> (i32, i32) {
    %c0_i32 = arith.constant 0 : i32
    %c0_i32_0 = arith.constant 0 : i32
    %c0_i32_1 = arith.constant 0 : i32
    return %c0_i32, %c0_i32_0 : i32, i32
  }
  func.func @transform_3(%arg0: i32) -> (i32, i32, i32) {
    %c0_i32 = arith.constant 0 : i32
    %c0_i32_0 = arith.constant 0 : i32
    %c0_i32_1 = arith.constant 0 : i32
    %c0_i32_2 = arith.constant 0 : i32
    return %c0_i32, %c0_i32_0, %c0_i32_1 : i32, i32, i32
  }
  func.func @transform_4(%arg0: i32) -> (i32, i32, i32, i32) {
    %c0_i32 = arith.constant 0 : i32
    %c0_i32_0 = arith.constant 0 : i32
    %c0_i32_1 = arith.constant 0 : i32
    %c0_i32_2 = arith.constant 0 : i32
    %c0_i32_3 = arith.constant 0 : i32
    return %c0_i32, %c0_i32_0, %c0_i32_1, %c0_i32_2 : i32, i32, i32, i32
  }
  func.func @transform_5(%arg0: i32) -> (i32, i32, i32) {
    %c0_i32 = arith.constant 0 : i32
    %c0_i32_0 = arith.constant 0 : i32
    %c0_i32_1 = arith.constant 0 : i32
    %c0_i32_2 = arith.constant 0 : i32
    return %c0_i32, %c0_i32_0, %c0_i32_1 : i32, i32, i32
  }
  func.func @transform_6(%arg0: i32) -> (i32, i32, i32) {
    %c0_i32 = arith.constant 0 : i32
    %c0_i32_0 = arith.constant 0 : i32
    %c0_i32_1 = arith.constant 0 : i32
    return %arg0, %c0_i32, %c0_i32_0 : i32, i32, i32
  }
}

</mosaic_0001>

<bundles_post_ra>
// kernel: tfblock_forward.1
= control target key start
LH: loop header
LB: loop body
LE: loop exit
PB: predicated region body
PF: predicated region fallthrough
CT: control target
= control target key end

     0   :  { %s3065_s21 = smov 0   ;;  %s3758_s0 = inlined_call_operand.vmem [shape: f32[2,4,64], index: 0, kind: input, shape index: {}]   ;;  %s3759_s1 = inlined_call_operand.vmem [shape: bf16[2,32,32], index: 1, kind: input, shape index: {}]   ;;  %s3760_s2 = inlined_call_operand.vmem [shape: f32[32,2], index: 2, kind: input, shape index: {}]   ;;  %s3761_s3 = inlined_call_operand.vmem [shape: bf16[2,96,32], index: 3, kind: input, shape index: {}]   ;;  %s3762_s4 = inlined_call_operand.vmem [shape: bf16[2,2,32,32], index: 4, kind: input, shape index: {}]   ;;  %s3763_s5 = inlined_call_operand.vmem [shape: f32[2,96,8], index: 5, kind: input, shape index: {}]   ;;  %s3764_s6 = inlined_call_operand.vmem [shape: f32[2,32,64], index: 6, kind: output, shape index: {}]  }
   0x1 LB: > { %s2411_s22 = sadd.s32 4294967295, %s2999_s21   ;;  %p2415_p0 = scmp.ge.s32.totalorder %s2999_s21, 1  ;;  %s2999_s21 = sphi %s3065_s21, %s16_s21  }
   0x2   : > { %p211_p1 = scmp.lt.s32.totalorder %s2999_s21, 3 }
   0x4   : > { %p212_p2 = pnand %p2415_p0, %p211_p1 }
   0x5   : > { %p240_p3 = scmp.lt.s32.totalorder (!%p212_p2), %s2411_s22, 1  ;;  %s3115_s24 = smov (!%p212_p2), 0  }
   0x6   : > { %215 = sbr.rel (%p212_p2) target bundleno = 2160 (0x870), region = 44 }
   0xb   : > { %v3021_v0 = vmov 0   ;;  %v263_v1 = vld [vmem:[%s3760_s2 + $0x10] sm:$0xff]  ;;  %v261_v2 = vld [vmem:[%s3760_s2] sm:$0xff]  ;;  %s3801_s22 = smov (!%p240_p3, %s2411_s22), 1  ;;  %vm302_vm0 = vcmask 1041408   ;;  %v264_v5 = vld [vmem:[%s3760_s2 + $0x18] sm:$0xff] }
   0xc   : > { %2609 = vset.pattern.permute.xlu0 %v3021_v0  ;;  %2610 = vset.pattern.permute.xlu1 %v3021_v0  ;;  %s2416_s27 = sshll.u32 %s3801_s22, 2  ;;  %s2530_s28 = sshll.u32 %s3801_s22, 5  ;;  %v262_v6 = vld [vmem:[%s3760_s2 + $0x8] sm:$0xff]  ;;  %v2531_v8 = vld [vmem:[%s3759_s1] sm:$0xff]  ;;  %vm295_vm1 = vcmask 31744   ;;  %v3022_v13 = vmov 1  }
   0xd   : > { %277 = vperm.xlu0 %2609, %v263_v1   ;;  %267 = vperm.xlu1 %2610, %v261_v2   ;;  %s243_s7 = scalar_lea.vmem %s3758_s0, %s2416_s27  ;;  %s3085_s10 = scalar_lea.vmem %s3764_s6, %s2530_s28  ;;  %v2532_v9 = vld [vmem:[%s3759_s1 + $0x8] sm:$0xff]  ;;  %v2533_v45 = vld [vmem:[%s3759_s1 + $0x10] sm:$0xff]  ;;  %v2534_v46 = vld [vmem:[%s3759_s1 + $0x18] sm:$0xff]  ;;  %vm357_vm2 = vcmask 261120  }
   0xe   : > { %v250_v3 = vld [vmem:[%s243_s7] sm:$0xf]  ;;  %2611 = vset.pattern.permute.xlu2 %v3022_v13 }
   0xf   : > { %v251_v4 = vpack.c.bf16 %v250_v3, %v250_v3  ;;  %388 = vperm.xlu2 %2611, %v261_v2  }
  0x11   : > { %v304_v7 = vsel %vm302_vm0, %v251_v4, 0 }
  0x12   : > { %313 = vmatpush.bf16.msra.mxu0 %v304_v7  ;;  %2547 = vmatpush.bf16.msra.mxu3 %v304_v7 }
  0x15   : > { %282 = vperm.xlu0 %2609, %v264_v5   ;;  %272 = vperm.xlu1 %2610, %v262_v6  }
  0x16   : > { %2431 = vmatmul.msk.bf16.vlgmr.msra.gmra.mxu0 %vm295_vm1, %v2531_v8  ;;  %2432 = vmatmul.msk.bf16.vlgmr.msra.gmra.mxu3 %vm295_vm1, %v2532_v9 }
  0x17   : > { %392 = vperm.xlu2 %2611, %v262_v6  }
  0x1d   : > { %2612 = vset.pattern.permute.xlu0 %v3022_v13  ;;  %2613 = vset.pattern.permute.xlu1 %v3022_v13 }
  0x1e   : > { %396 = vperm.xlu0 %2612, %v263_v1   ;;  %400 = vperm.xlu1 %2613, %v264_v5  }
  0x69   : > { %v389_v47 = vpop.permute.xlu2 %388 }
  0x71   : > { %v393_v57 = vpop.permute.xlu2 %392 }
  0x7f   : > { %v268_v10 = vpop.permute.xlu1 %267  ;;  %v278_v12 = vpop.permute.xlu0 %277 }
  0x87   : > { %v273_v15 = vpop.permute.xlu1 %272  ;;  %v283_v24 = vpop.permute.xlu0 %282 }
  0x90   : > { %v397_v52 = vpop.permute.xlu0 %396  ;;  %v401_v60 = vpop.permute.xlu1 %400 }
  0x93   : > { %v315_v11 = vpop.f32.mrf.mxu0 }
  0x94   : > { %v316_v18 = vadd.f32 %v315_v11, %v268_v10 }
  0x96   : > { %v325_v22 = vadd.f32 3.0, %v316_v18 }
  0x98   : > { %v329_v28 = vmax.f32 %v325_v22, 0.0 }
  0x99   : > { %v320_v14 = vpop.f32.mrf.mxu3 }
  0x9a   : > { %v321_v16 = vadd.f32 %v320_v14, %v278_v12  ;;  %v333_v33 = vmin.f32 %v329_v28, 6.0 }
  0x9b   : > { %v317_v17 = vpop.f32.mrf.mxu0 }
  0x9c   : > { %v327_v19 = vadd.f32 3.0, %v321_v16  ;;  %v318_v20 = vadd.f32 %v317_v17, %v273_v15  ;;  %v337_v38 = vmul.f32 %v333_v33, %v316_v18 }
  0x9e   : > { %v326_v21 = vadd.f32 3.0, %v318_v20  ;;  %v331_v23 = vmax.f32 %v327_v19, 0.0  ;;  %v341_v43 = vmul.f32 0.16666667, %v337_v38 }
  0xa0   : > { %v330_v26 = vmax.f32 %v326_v21, 0.0  ;;  %v335_v29 = vmin.f32 %v331_v23, 6.0 }
  0xa1   : > { %v322_v25 = vpop.f32.mrf.mxu3 }
  0xa2   : > { %v323_v27 = vadd.f32 %v322_v25, %v283_v24  ;;  %v334_v31 = vmin.f32 %v330_v26, 6.0  ;;  %v339_v34 = vmul.f32 %v335_v29, %v321_v16 }
  0xa4   : > { %v328_v30 = vadd.f32 3.0, %v323_v27  ;;  %v338_v36 = vmul.f32 %v334_v31, %v318_v20  ;;  %v343_v39 = vmul.f32 0.16666667, %v339_v34 }
  0xa6   : > { %v332_v32 = vmax.f32 %v328_v30, 0.0  ;;  %v342_v41 = vmul.f32 0.16666667, %v338_v36 }
  0xa8   : > { %v336_v35 = vmin.f32 %v332_v32, 6.0  ;;  %v345_v44 = vpack.c.bf16 %v342_v41, %v341_v43 }
  0xaa   : > { %v340_v37 = vmul.f32 %v336_v35, %v323_v27 }
  0xac   : > { %v344_v40 = vmul.f32 0.16666667, %v340_v37 }
  0xae   : > { %v346_v42 = vpack.c.bf16 %v344_v40, %v343_v39 }
  0xb0   : > { %370 = vmatpush.bf16.msra.mxu1 %v346_v42  ;;  %2548 = vmatpush.bf16.msra.mxu2 %v346_v42 }
  0xb4   : > { %371 = vmatpush.bf16.msra.mxu1 %v345_v44  ;;  %2549 = vmatpush.bf16.msra.mxu2 %v345_v44 }
  0xb7   : > { %2441 = vmatmul.msk.bf16.vlgmr.msra.gmra.mxu1 %vm357_vm2, %v2533_v45  ;;  %2442 = vmatmul.msk.bf16.vlgmr.msra.gmra.mxu2 %vm357_vm2, %v2534_v46 }
 0x134   : > { %v373_v48 = vpop.f32.mrf.mxu1 }
 0x135   : > { %v383_v49 = vadd.f32 %v373_v48, %v341_v43 }
 0x137   : > { %v403_v50 = vadd.f32 %v389_v47, %v383_v49  }
 0x13a   : > { %v378_v51 = vpop.f32.mrf.mxu2 }
 0x13b   : > { %v385_v53 = vadd.f32 %v378_v51, %v343_v39 }
 0x13c   : > { %v375_v54 = vpop.f32.mrf.mxu1 }
 0x13d   : > { %v405_v55 = vadd.f32 %v397_v52, %v385_v53   ;;  %v384_v56 = vadd.f32 %v375_v54, %v342_v41 }
 0x13f   : > { %v404_v58 = vadd.f32 %v393_v57, %v384_v56  }
 0x142   : > { %v380_v59 = vpop.f32.mrf.mxu2 }
 0x143   : > { %v386_v61 = vadd.f32 %v380_v59, %v344_v40 }
 0x145   : > { %v406_v62 = vadd.f32 %v401_v60, %v386_v61  }
 0x146 LB: >> { %3776 = vst [vmem:[#allocation2_spill] sm:$0xff] %v3003_v62  ;;  %v3023_v63 = vmov 3   ;;  %v3024_v0 = vmov 2   ;;  %s443_s25 = smul.u32 96, %s3019_s24  ;;  %v3025_v4 = vmov 32.0   ;;  %vm457_vm3 = vcmask 523264   ;;  %s3019_s24 = sphi %s3115_s24, %s412_s24   ;;  %v3015_v50 = vphi %v403_v50, %v3799_v50   ;;  %v3011_v58 = vphi %v404_v58, %v3798_v58   ;;  %v3007_v55 = vphi %v405_v55, %v3797_v55   ;;  %v3003_v62 = vphi %v406_v62, %v3796_v62  }
 0x147   : >> { %3777 = vst [vmem:[#allocation3_spill] sm:$0xff] %v3007_v55  ;;  %2615 = vset.pattern.permute.xlu1 %v3023_v63  ;;  %2614 = vset.pattern.permute.xlu0 %v3024_v0  ;;  %2835 = vrcp.f32 %v3025_v4  ;;  %v458_v8 = vsel %vm457_vm3, %v3015_v50, 0.0  ;;  %v459_v9 = vsel %vm457_vm3, %v3011_v58, 0.0  ;;  %v461_v11 = vsel %vm457_vm3, %v3007_v55, 0.0  ;;  %s2535_s29 = smul.u32 48, %s3019_s24  ;;  %s2542_s9 = sshll.u32 %s3019_s24, 5 }
 0x148   : >> { %3778 = vst [vmem:[#allocation4_spill] sm:$0xff] %v3011_v58  ;;  %2616 = vset.pattern.permute.xlu2 %v3024_v0  ;;  %s3136_s28 = scalar_lea.vmem %s3763_s5, %s443_s25  ;;  %v460_v10 = vadd.f32 %v459_v9, %v458_v8  ;;  %v463_v14 = vsel %vm457_vm3, %v3003_v62, 0.0  ;;  %v3026_v56 = vmov 0   ;;  %vm1062_vm8 = vcmask 1043456   ;;  %s3712_s13 = scalar_lea.vmem %s3762_s4, %s2542_s9 }
 0x149   : >> { %3779 = vst [vmem:[#allocation5_spill] sm:$0xff] %v3015_v50  ;;  %v3139_v1 = vld [vmem:[%s3136_s28 + $0x10] sm:$0xff]  ;;  %v3144_v2 = vld [vmem:[%s3136_s28] sm:$0xff]  ;;  %v3148_v3 = vld [vmem:[%s3136_s28 + $0x18] sm:$0xff]  ;;  %s419_s8 = scalar_lea.vmem %s3761_s3, %s2535_s29  ;;  %vm1049_vm9 = vcmask 64512   ;;  %s412_s24 = sadd.s32 1, %s3019_s24  }
 0x14a   : >> { %549 = vperm.xlu1 %2615, %v3139_v1   ;;  %528 = vperm.xlu0 %2614, %v3139_v1   ;;  %v3153_v5 = vld [vmem:[%s3136_s28 + $0x8] sm:$0xff]  ;;  %v462_v12 = vadd.f32 %v461_v11, %v460_v10  ;;  %v449_v10 = vld [vmem:[%s3136_s28 + $0x20] sm:$0xff]  ;;  %p409_p4 = scmp.ge.s32.totalorder %s412_s24, 2  }
 0x14b   : >> { %518 = vperm.xlu2 %2616, %v3144_v2  }
 0x14c   : >> { %v464_v15 = vadd.f32 %v463_v14, %v462_v12 }
 0x14d   : >> { %v2836_v6 = vpop.eup %2835 }
 0x14e   : >> { %v472_v7 = vmul.f32 32.0, %v2836_v6  ;;  %v465_v16 = vrot.slane %v464_v15, 4  ;;  %vm476_vm4 = vweird.f32 %v2836_v6 }
 0x150   : >> { %v473_v13 = vsub.f32 1.0, %v472_v7  ;;  %v466_v18 = vadd.f32 %v465_v16, %v464_v15 }
 0x152   : >> { %553 = vperm.xlu1 %2615, %v3148_v3   ;;  %533 = vperm.xlu0 %2614, %v3148_v3   ;;  %v474_v17 = vmul.f32 %v2836_v6, %v473_v13  ;;  %v467_v19 = vrot.slane %v466_v18, 2 }
 0x153   : >> { %523 = vperm.xlu2 %2616, %v3153_v5  }
 0x154   : >> { %v475_v20 = vadd.f32 %v2836_v6, %v474_v17  ;;  %v468_v21 = vadd.f32 %v467_v19, %v466_v18 }
 0x156   : >> { %v469_v22 = vrot.slane %v468_v21, 1  ;;  %v3166_v23 = vsel %vm476_vm4, %v2836_v6, %v475_v20 }
 0x157   : >> { %3780 = vst [vmem:[#allocation6_spill] sm:$0xff] %v3166_v23 }
 0x158   : >> { %v470_v24 = vadd.f32 %v469_v22, %v468_v21  ;;  %v2536_v21 = vld [vmem:[%s419_s8] sm:$0xff]  ;;  %v451_v22 = vld [vmem:[%s3136_s28 + $0x30] sm:$0xff] }
 0x15a   : >> { %2617 = vset.pattern.permute.xlu0 %v3023_v63  ;;  %545 = vperm.xlu1 %2615, %v3153_v5   ;;  %v478_v25 = vmul.f32 %v3166_v23, %v470_v24  ;;  %v2537_v24 = vld [vmem:[%s419_s8 + $0x8] sm:$0xff] }
 0x15b   : >> { %541 = vperm.xlu0 %2617, %v3144_v2   ;;  %2618 = vset.pattern.permute.xlu2 %v3026_v56 }
 0x15c   : >> { %v479_v26 = vsub.f32 %v3015_v50, %v478_v25  ;;  %v480_v27 = vsub.f32 %v3011_v58, %v478_v25  ;;  %v481_v28 = vsub.f32 %v3007_v55, %v478_v25  ;;  %v482_v31 = vsub.f32 %v3003_v62, %v478_v25  ;;  %563 = vperm.xlu2 %2618, %v3144_v2   ;;  %v450_v25 = vld [vmem:[%s3136_s28 + $0x28] sm:$0xff] }
 0x15e   : >> { %v483_v29 = vmul.f32 %v479_v26, %v479_v26  ;;  %v484_v30 = vmul.f32 %v480_v27, %v480_v27  ;;  %v485_v32 = vmul.f32 %v481_v28, %v481_v28  ;;  %v486_v36 = vmul.f32 %v482_v31, %v482_v31 }
 0x160   : >> { %v487_v33 = vsel %vm457_vm3, %v483_v29, 0.0  ;;  %v488_v34 = vsel %vm457_vm3, %v484_v30, 0.0  ;;  %v490_v37 = vsel %vm457_vm3, %v485_v32, 0.0  ;;  %v492_v39 = vsel %vm457_vm3, %v486_v36, 0.0  ;;  %v2539_v29 = vld [vmem:[%s419_s8 + $0x18] sm:$0xff]  ;;  %v455_v30 = vld [vmem:[%s3136_s28 + $0x50] sm:$0xff] }
 0x161   : >> { %v489_v35 = vadd.f32 %v488_v34, %v487_v33  ;;  %v2540_v32 = vld [vmem:[%s419_s8 + $0x20] sm:$0xff]  ;;  %v2541_v33 = vld [vmem:[%s419_s8 + $0x28] sm:$0xff] }
 0x162   : >> { %2619 = vset.pattern.permute.xlu1 %v3026_v56 }
 0x163   : >> { %v491_v38 = vadd.f32 %v490_v37, %v489_v35  ;;  %580 = vperm.xlu1 %2619, %v449_v10  }
 0x164   : >> { %567 = vperm.xlu2 %2618, %v3153_v5  }
 0x165   : >> { %v493_v40 = vadd.f32 %v492_v39, %v491_v38 }
 0x167   : >> { %v494_v41 = vrot.slane %v493_v40, 4 }
 0x169   : >> { %v495_v42 = vadd.f32 %v494_v41, %v493_v40 }
 0x16b   : >> { %v496_v43 = vrot.slane %v495_v42, 2  ;;  %571 = vperm.xlu1 %2619, %v3139_v1   ;;  %v453_v1 = vld [vmem:[%s3136_s28 + $0x40] sm:$0xff] }
 0x16c   : >> { %575 = vperm.xlu2 %2618, %v3148_v3  }
 0x16d   : >> { %v497_v44 = vadd.f32 %v496_v43, %v495_v42 }
 0x16f   : >> { %v498_v45 = vrot.slane %v497_v44, 1 }
 0x171   : >> { %v499_v46 = vadd.f32 %v498_v45, %v497_v44 }
 0x173   : >> { %v500_v47 = vmul.f32 %v499_v46, %v3166_v23  ;;  %585 = vperm.xlu1 %2619, %v450_v25  }
 0x174   : >> { %590 = vperm.xlu2 %2618, %v451_v22  }
 0x175   : >> { %v501_v48 = vadd.f32 1e-05, %v500_v47 }
 0x177   : >> { %2837 = vrsqrt.f32 %v501_v48  ;;  %vm508_vm5 = vweird.f32 %v501_v48 }
 0x17d   : >> { %v2838_v49 = vpop.eup %2837 }
 0x17e   : >> { %v503_v51 = vmul.f32 %v2838_v49, %v501_v48  ;;  %vm509_vm6 = vweird.f32 %v2838_v49 }
 0x17f   : >> { %vm510_vm7 = vmor %vm508_vm5, %vm509_vm6 }
 0x180   : >> { %v504_v52 = vmul.f32 %v2838_v49, %v503_v51 }
 0x182   : >> { %v505_v53 = vmul.f32 0.5, %v504_v52 }
 0x184   : >> { %v506_v54 = vsub.f32 1.5, %v505_v53 }
 0x186   : >> { %v507_v57 = vmul.f32 %v2838_v49, %v506_v54 }
 0x188   : >> { %v511_v59 = vsel %vm510_vm7, %v2838_v49, %v507_v57 }
 0x189   : >> { %v514_v0 = vmul.f32 %v511_v59, %v481_v28  ;;  %v515_v4 = vmul.f32 %v511_v59, %v482_v31  ;;  %v513_v11 = vmul.f32 %v511_v59, %v480_v27  ;;  %v512_v13 = vmul.f32 %v511_v59, %v479_v26  ;;  %v452_v26 = vld [vmem:[%s3136_s28 + $0x38] sm:$0xff]  ;;  %v2538_v27 = vld [vmem:[%s419_s8 + $0x10] sm:$0xff]  ;;  %v454_v28 = vld [vmem:[%s3136_s28 + $0x48] sm:$0xff] }
 0x18a   : >> { %595 = vperm.xlu1 %2619, %v452_v26   ;;  %v456_v31 = vld [vmem:[%s3136_s28 + $0x58] sm:$0xff] }
 0x192   : >> { %600 = vperm.xlu1 %2619, %v453_v1  }
 0x19a   : >> { %605 = vperm.xlu1 %2619, %v454_v28  }
 0x1a2   : >> { %610 = vperm.xlu1 %2619, %v455_v30  }
 0x1a5   : >> { %v519_v63 = vpop.permute.xlu2 %518 }
 0x1a6   : >> { %v536_v5 = vmul.f32 %v519_v63, %v512_v13 }
 0x1aa   : >> { %615 = vperm.xlu1 %2619, %v456_v31  }
 0x1ad   : >> { %v524_v14 = vpop.permute.xlu2 %523 }
 0x1ae   : >> { %v537_v16 = vmul.f32 %v524_v14, %v513_v11 }
 0x1b6   : >> { %v564_v34 = vpop.permute.xlu2 %563 }
 0x1bc   : >> { %v550_v60 = vpop.permute.xlu1 %549  ;;  %v529_v61 = vpop.permute.xlu0 %528 }
 0x1bd   : >> { %v538_v6 = vmul.f32 %v529_v61, %v514_v0 }
 0x1be   : >> { %v568_v36 = vpop.permute.xlu2 %567 }
 0x1bf   : >> { %v558_v12 = vadd.f32 %v550_v60, %v538_v6 }
 0x1c4   : >> { %v554_v7 = vpop.permute.xlu1 %553  ;;  %v534_v8 = vpop.permute.xlu0 %533 }
 0x1c5   : >> { %v539_v9 = vmul.f32 %v534_v8, %v515_v4 }
 0x1c6   : >> { %v576_v45 = vpop.permute.xlu2 %575 }
 0x1c7   : >> { %v559_v2 = vadd.f32 %v554_v7, %v539_v9 }
 0x1c9   : >> { %v561_v15 = vpack.c.bf16 %v559_v2, %v558_v12 }
 0x1cb   : >> { %672 = vmatpush.bf16.msra.mxu0 %v561_v15 }
 0x1cc   : >> { %v546_v17 = vpop.permute.xlu1 %545 }
 0x1cd   : >> { %v557_v18 = vadd.f32 %v546_v17, %v537_v16  ;;  %v542_v19 = vpop.permute.xlu0 %541 }
 0x1ce   : >> { %v556_v20 = vadd.f32 %v542_v19, %v536_v5  ;;  %v591_v59 = vpop.permute.xlu2 %590 }
 0x1d0   : >> { %v560_v3 = vpack.c.bf16 %v557_v18, %v556_v20 }
 0x1d2   : >> { %673 = vmatpush.bf16.msra.mxu0 %v560_v3 }
 0x1d5   : >> { %2470 = vmatmul.msk.bf16.vlgmr.msra.gmra.mxu0 %vm357_vm2, %v2536_v21  ;;  %v581_v40 = vpop.permute.xlu1 %580 }
 0x1dd   : >> { %v572_v43 = vpop.permute.xlu1 %571 }
 0x1e5   : >> { %2471 = vmatmul.msk.bf16.gmra.mxu0 %vm357_vm2, %v2537_v24  ;;  %v586_v51 = vpop.permute.xlu1 %585 }
 0x1f5   : >> { %2472 = vmatmul.msk.bf16.gmra.mxu0 %vm357_vm2, %v2538_v27 }
 0x1fc   : >> { %v596_v61 = vpop.permute.xlu1 %595 }
 0x204   : >> { %v601_v10 = vpop.permute.xlu1 %600 }
 0x205   : >> { %2473 = vmatmul.msk.bf16.gmra.mxu0 %vm357_vm2, %v2539_v29 }
 0x20c   : >> { %v606_v14 = vpop.permute.xlu1 %605 }
 0x214   : >> { %v611_v17 = vpop.permute.xlu1 %610 }
 0x215   : >> { %2474 = vmatmul.msk.bf16.gmra.mxu0 %vm357_vm2, %v2540_v32 }
 0x21c   : >> { %v616_v19 = vpop.permute.xlu1 %615 }
 0x225   : >> { %2475 = vmatmul.msk.bf16.gmra.mxu0 %vm357_vm2, %v2541_v33 }
 0x252   : >> { %v675_v35 = vpop.f32.mrf.mxu0 }
 0x253   : >> { %v676_v38 = vadd.f32 %v675_v35, %v564_v34 }
 0x25a   : >> { %v677_v37 = vpop.f32.mrf.mxu0 }
 0x25b   : >> { %v678_v39 = vadd.f32 %v677_v37, %v568_v36 }
 0x25d   : >> { %v2620_v41 = vpack.i.bf16 %v678_v39, %v676_v38 }
 0x25f   : >> { %2621 = vxpose.xlu0.b32.start.end [1/1] (short) (narrow) %v2620_v41, 64 }
 0x262   : >> { %v680_v42 = vpop.f32.mrf.mxu0 }
 0x263   : >> { %v681_v44 = vadd.f32 %v680_v42, %v572_v43 }
 0x26a   : >> { %v682_v46 = vpop.f32.mrf.mxu0 }
 0x26b   : >> { %v683_v47 = vadd.f32 %v682_v46, %v576_v45 }
 0x26d   : >> { %v2662_v48 = vpack.i.bf16 %v683_v47, %v681_v44 }
 0x26f   : >> { %2663 = vxpose.xlu2.b32.start.end [1/1] (short) (narrow) %v2662_v48, 64 }
 0x272   : >> { %v685_v49 = vpop.f32.mrf.mxu0 }
 0x273   : >> { %v686_v53 = vadd.f32 %v685_v49, %v581_v40 }
 0x275   : >> { %v865_v56 = vpack.c.bf16 %v686_v53, %v686_v53 }
 0x277   : >> { %v1064_v0 = vsel %vm1062_vm8, %v865_v56, 0 }
 0x278   : >> { %1073 = vmatpush.bf16.msra.mxu1 %v1064_v0  ;;  %2550 = vmatpush.bf16.msra.mxu2 %v1064_v0 }
 0x27a   : >> { %v687_v52 = vpop.f32.mrf.mxu0 }
 0x27b   : >> { %v688_v54 = vadd.f32 %v687_v52, %v586_v51 }
 0x27d   : >> { %v866_v57 = vpack.c.bf16 %v688_v54, %v688_v54 }
 0x27f   : >> { %v1128_v4 = vsel %vm1062_vm8, %v866_v57, 0 }
 0x280   : >> { %1137 = vmatpush.bf16.msrb.mxu2 %v1128_v4 }
 0x282   : >> { %v690_v60 = vpop.f32.mrf.mxu0 }
 0x283   : >> { %v691_v63 = vadd.f32 %v690_v60, %v591_v59 }
 0x285   : >> { %v867_v6 = vpack.c.bf16 %v691_v63, %v691_v63 }
 0x287   : >> { %v1192_v7 = vsel %vm1062_vm8, %v867_v6, 0 }
 0x288   : >> { %1201 = vmatpush.bf16.msra.mxu3 %v1192_v7 }
 0x28a   : >> { %v692_v8 = vpop.f32.mrf.mxu0 }
 0x28b   : >> { %v693_v9 = vadd.f32 %v692_v8, %v596_v61 }
 0x28d   : >> { %v868_v11 = vpack.c.bf16 %v693_v9, %v693_v9 }
 0x28f   : >> { %v1256_v12 = vsel %vm1062_vm8, %v868_v11, 0 }
 0x290   : >> { %1265 = vmatpush.bf16.msrb.mxu1 %v1256_v12 }
 0x292   : >> { %v695_v2 = vpop.f32.mrf.mxu0 }
 0x293   : >> { %v3200_v13 = vadd.f32 %v695_v2, %v601_v10 }
 0x29a   : >> { %v697_v15 = vpop.f32.mrf.mxu0 }
 0x29b   : >> { %v3202_v16 = vadd.f32 %v697_v15, %v606_v14 }
 0x29d   : >> { %v2704_v5 = vpack.i.bf16 %v3202_v16, %v3200_v13 }
 0x2a2   : >> { %v700_v18 = vpop.f32.mrf.mxu0 }
 0x2a3   : >> { %v701_v3 = vadd.f32 %v700_v18, %v611_v17 }
 0x2aa   : >> { %v702_v20 = vpop.f32.mrf.mxu0 }
 0x2ab   : >> { %v703_v21 = vadd.f32 %v702_v20, %v616_v19 }
 0x2ad   : >> { %v2746_v22 = vpack.i.bf16 %v703_v21, %v701_v3 }
 0x2af   : >> { %2747 = vxpose.xlu0.b32.start.end [1/1] (short) (narrow) %v2746_v22, 64 }
 0x303   : >> { %v2622_v24 = vpop.trf.xlu0 }
 0x304   : >> { %v2626_v25 = vunpack.i.h.bf16 %v2622_v24  ;;  %v2623_v26 = vunpack.i.l.bf16 %v2622_v24 }
 0x306   : >> { %v841_v1 = vpack.c.bf16 %v2626_v25, %v2626_v25  ;;  %v833_v28 = vpack.c.bf16 %v2623_v26, %v2623_v26 }
 0x308   : >> { %v3206_v27 = vpop.trf.xlu2  ;;  %v1103_v36 = vunpack.c.l.b16 %v841_v1  ;;  %v1037_v38 = vunpack.c.l.b16 %v833_v28 }
 0x309   : >> { %v2665_v30 = vunpack.i.l.bf16 %v3206_v27 }
 0x30b   : >> { %v2627_v29 = vpop.trf.xlu0  ;;  %v849_v35 = vpack.c.bf16 %v2665_v30, %v2665_v30 }
 0x30c   : >> { %v2631_v31 = vunpack.i.h.bf16 %v2627_v29  ;;  %v2628_v32 = vunpack.i.l.bf16 %v2627_v29 }
 0x30d   : >> { %v1167_v46 = vunpack.c.l.b16 %v849_v35 }
 0x30e   : >> { %v842_v33 = vpack.c.bf16 %v2631_v31, %v2631_v31  ;;  %v834_v34 = vpack.c.bf16 %v2628_v32, %v2628_v32 }
 0x310   : >> { %v1104_v37 = vunpack.c.l.b16 %v842_v33  ;;  %v1038_v39 = vunpack.c.l.b16 %v834_v34  ;;  %v3209_v40 = vpop.trf.xlu2 }
 0x311   : >> { %v2670_v41 = vunpack.i.l.bf16 %v3209_v40 }
 0x312   : >> { %v1045_v42 = vpack.c.b16 %v1038_v39, %v1037_v38  ;;  %v3212_v43 = vpack.c.b16 %v1104_v37, %v1103_v36  ;;  %v2668_v39 = vunpack.i.h.bf16 %v3206_v27 }
 0x313   : >> { %v2632_v44 = vpop.trf.xlu0  ;;  %v850_v45 = vpack.c.bf16 %v2670_v41, %v2670_v41  ;;  %v2673_v41 = vunpack.i.h.bf16 %v3209_v40 }
 0x314   : >> { %2476 = vmatmul.msk.bf16.vlgmr.msra.gmra.mxu1 %vm1049_vm9, %v1045_v42  ;;  %v2636_v48 = vunpack.i.h.bf16 %v2632_v44  ;;  %v2633_v49 = vunpack.i.l.bf16 %v2632_v44 }
 0x315   : >> { %v1168_v47 = vunpack.c.l.b16 %v850_v45 }
 0x316   : >> { %v843_v53 = vpack.c.bf16 %v2636_v48, %v2636_v48  ;;  %v835_v54 = vpack.c.bf16 %v2633_v49, %v2633_v49  ;;  %v858_v48 = vpack.c.bf16 %v2673_v41, %v2673_v41 }
 0x317   : >> { %v1175_v51 = vpack.c.b16 %v1168_v47, %v1167_v46  ;;  %v857_v47 = vpack.c.bf16 %v2668_v39, %v2668_v39 }
 0x318   : >> { %v3215_v52 = vpop.trf.xlu2  ;;  %v1039_v4 = vunpack.c.l.b16 %v835_v54  ;;  %v1105_v8 = vunpack.c.l.b16 %v843_v53  ;;  %v1232_v54 = vunpack.c.l.b16 %v858_v48 }
 0x319   : >> { %2484 = vmatmul.msk.bf16.vlgmr.msra.gmra.mxu3 %vm1049_vm9, %v1175_v51  ;;  %v2675_v57 = vunpack.i.l.bf16 %v3215_v52  ;;  %v1231_v53 = vunpack.c.l.b16 %v857_v47 }
 0x31b   : >> { %v2637_v56 = vpop.trf.xlu0  ;;  %v851_v0 = vpack.c.bf16 %v2675_v57, %v2675_v57 }
 0x31c   : >> { %v2641_v59 = vunpack.i.h.bf16 %v2637_v56  ;;  %v2638_v60 = vunpack.i.l.bf16 %v2637_v56 }
 0x31d   : >> { %v1169_v15 = vunpack.c.l.b16 %v851_v0  ;;  %v2678_v0 = vunpack.i.h.bf16 %v3215_v52 }
 0x31e   : >> { %v844_v61 = vpack.c.bf16 %v2641_v59, %v2641_v59  ;;  %v836_v63 = vpack.c.bf16 %v2638_v60, %v2638_v60 }
 0x320   : >> { %v1040_v6 = vunpack.c.l.b16 %v836_v63  ;;  %v2679_v7 = vpop.trf.xlu2  ;;  %v1106_v9 = vunpack.c.l.b16 %v844_v61  ;;  %v1239_v61 = vpack.c.b16 %v1232_v54, %v1231_v53 }
 0x321   : >> { %v2680_v10 = vunpack.i.l.bf16 %v2679_v7 }
 0x322   : >> { %v1046_v11 = vpack.c.b16 %v1040_v6, %v1039_v4  ;;  %v3219_v12 = vpack.c.b16 %v1106_v9, %v1105_v8  ;;  %v2683_v4 = vunpack.i.h.bf16 %v2679_v7  ;;  %v859_v8 = vpack.c.bf16 %v2678_v0, %v2678_v0 }
 0x323   : >> { %v2642_v2 = vpop.trf.xlu0  ;;  %v852_v14 = vpack.c.bf16 %v2680_v10, %v2680_v10 }
 0x324   : >> { %2477 = vmatmul.msk.bf16.gmra.mxu1 %vm1049_vm9, %v1046_v11  ;;  %v2646_v18 = vunpack.i.h.bf16 %v2642_v2  ;;  %v2643_v19 = vunpack.i.l.bf16 %v2642_v2  ;;  %v860_v9 = vpack.c.bf16 %v2683_v4, %v2683_v4  ;;  %v1233_v10 = vunpack.c.l.b16 %v859_v8 }
 0x325   : >> { %v1170_v17 = vunpack.c.l.b16 %v852_v14 }
 0x326   : >> { %v845_v21 = vpack.c.bf16 %v2646_v18, %v2646_v18  ;;  %v837_v22 = vpack.c.bf16 %v2643_v19, %v2643_v19  ;;  %v1234_v11 = vunpack.c.l.b16 %v860_v9 }
 0x327   : >> { %v1176_v20 = vpack.c.b16 %v1170_v17, %v1169_v15 }
 0x328   : >> { %v2684_v3 = vpop.trf.xlu2  ;;  %v1041_v31 = vunpack.c.l.b16 %v837_v22  ;;  %v1107_v34 = vunpack.c.l.b16 %v845_v21  ;;  %v1240_v14 = vpack.c.b16 %v1234_v11, %v1233_v10 }
 0x329   : >> { %2485 = vmatmul.msk.bf16.gmra.mxu3 %vm1049_vm9, %v1176_v20  ;;  %v2685_v25 = vunpack.i.l.bf16 %v2684_v3  ;;  %v2688_v17 = vunpack.i.h.bf16 %v2684_v3 }
 0x32b   : >> { %v2647_v24 = vpop.trf.xlu0  ;;  %v853_v30 = vpack.c.bf16 %v2685_v25, %v2685_v25  ;;  %v861_v21 = vpack.c.bf16 %v2688_v17, %v2688_v17 }
 0x32c   : >> { %v2651_v26 = vunpack.i.h.bf16 %v2647_v24  ;;  %v2648_v1 = vunpack.i.l.bf16 %v2647_v24 }
 0x32d   : >> { %v1171_v45 = vunpack.c.l.b16 %v853_v30 }
 0x32e   : >> { %v846_v28 = vpack.c.bf16 %v2651_v26, %v2651_v26  ;;  %v838_v29 = vpack.c.bf16 %v2648_v1, %v2648_v1  ;;  %v1235_v26 = vunpack.c.l.b16 %v861_v21 }
 0x330   : >> { %v1042_v32 = vunpack.c.l.b16 %v838_v29  ;;  %v2689_v33 = vpop.trf.xlu2  ;;  %v1108_v35 = vunpack.c.l.b16 %v846_v28 }
 0x331   : >> { %v2690_v36 = vunpack.i.l.bf16 %v2689_v33  ;;  %v2693_v18 = vunpack.i.h.bf16 %v2689_v33 }
 0x332   : >> { %v1047_v37 = vpack.c.b16 %v1042_v32, %v1041_v31  ;;  %v1113_v38 = vpack.c.b16 %v1108_v35, %v1107_v34 }
 0x333   : >> { %v3225_v42 = vpop.trf.xlu0  ;;  %v854_v44 = vpack.c.bf16 %v2690_v36, %v2690_v36  ;;  %v862_v22 = vpack.c.bf16 %v2693_v18, %v2693_v18 }
 0x334   : >> { %2478 = vmatmul.msk.bf16.gmra.mxu1 %vm1049_vm9, %v1047_v37  ;;  %v2653_v51 = vunpack.i.l.bf16 %v3225_v42  ;;  %v2656_v35 = vunpack.i.h.bf16 %v3225_v42 }
 0x335   : >> { %v1172_v46 = vunpack.c.l.b16 %v854_v44  ;;  %v1236_v1 = vunpack.c.l.b16 %v862_v22 }
 0x336   : >> { %v839_v27 = vpack.c.bf16 %v2653_v51, %v2653_v51  ;;  %v847_v37 = vpack.c.bf16 %v2656_v35, %v2656_v35 }
 0x337   : >> { %v1177_v49 = vpack.c.b16 %v1172_v46, %v1171_v45  ;;  %v1241_v28 = vpack.c.b16 %v1236_v1, %v1235_v26 }
 0x338   : >> { %v1043_v59 = vunpack.c.l.b16 %v839_v27  ;;  %v2694_v6 = vpop.trf.xlu2 }
 0x339   : >> { %2486 = vmatmul.msk.bf16.gmra.mxu3 %vm1049_vm9, %v1177_v49  ;;  %v2695_v2 = vunpack.i.l.bf16 %v2694_v6 }
 0x33b   : >> { %v2657_v56 = vpop.trf.xlu0  ;;  %v855_v15 = vpack.c.bf16 %v2695_v2, %v2695_v2 }
 0x33c   : >> { %v2658_v57 = vunpack.i.l.bf16 %v2657_v56  ;;  %v2661_v34 = vunpack.i.h.bf16 %v2657_v56 }
 0x33d   : >> { %v1173_v20 = vunpack.c.l.b16 %v855_v15 }
 0x33e   : >> { %v840_v40 = vpack.c.bf16 %v2658_v57, %v2658_v57  ;;  %v848_v36 = vpack.c.bf16 %v2661_v34, %v2661_v34 }
 0x340   : >> { %v1044_v60 = vunpack.c.l.b16 %v840_v40  ;;  %v2699_v52 = vpop.trf.xlu2  ;;  %v1110_v39 = vunpack.c.l.b16 %v848_v36 }
 0x341   : >> { %v2700_v7 = vunpack.i.l.bf16 %v2699_v52  ;;  %v2703_v3 = vunpack.i.h.bf16 %v2699_v52 }
 0x342   : >> { %v1048_v63 = vpack.c.b16 %v1044_v60, %v1043_v59 }
 0x343   : >> { %v856_v19 = vpack.c.bf16 %v2700_v7, %v2700_v7  ;;  %v864_v30 = vpack.c.bf16 %v2703_v3, %v2703_v3 }
 0x344   : >> { %2479 = vmatmul.msk.bf16.vlgmr.msra.gmra.mxu2 %vm1049_vm9, %v1048_v63  ;;  %2488 = vmatmul.msk.bf16.vlgmr.msrb.gmra.mxu1 %vm1049_vm9, %v1239_v61 }
 0x345   : >> { %v1174_v24 = vunpack.c.l.b16 %v856_v19  ;;  %v1238_v32 = vunpack.c.l.b16 %v864_v30 }
 0x347   : >> { %v1178_v25 = vpack.c.b16 %v1174_v24, %v1173_v20 }
 0x349   : >> { %2487 = vmatmul.msk.bf16.gmra.mxu3 %vm1049_vm9, %v1178_v25 }
 0x353   : >> { %v3264_v54 = vpop.trf.xlu0 }
 0x354   : >> { %2480 = vmatmul.msk.bf16.vlgmr.msrb.gmra.mxu2 %vm1049_vm9, %v3212_v43  ;;  %2489 = vmatmul.msk.bf16.gmra.mxu1 %vm1049_vm9, %v1240_v14  ;;  %v2698_v43 = vunpack.i.h.bf16 %v2694_v6  ;;  %v2752_v58 = vunpack.i.h.bf16 %v3264_v54 }
 0x356   : >> { %v863_v29 = vpack.c.bf16 %v2698_v43, %v2698_v43 }
 0x358   : >> { %v1237_v31 = vunpack.c.l.b16 %v863_v29 }
 0x35a   : >> { %v1242_v33 = vpack.c.b16 %v1238_v32, %v1237_v31 }
 0x35b   : >> { %v3274_v59 = vpop.trf.xlu0 }
 0x363   : >> { %v3280_v63 = vpop.trf.xlu0 }
 0x364   : >> { %2481 = vmatmul.msk.bf16.gmra.mxu2 %vm1049_vm9, %v3219_v12  ;;  %2490 = vmatmul.msk.bf16.gmra.mxu1 %vm1049_vm9, %v1241_v28  ;;  %v1109_v12 = vunpack.c.l.b16 %v847_v37  ;;  %v2762_v13 = vunpack.i.h.bf16 %v3280_v63 }
 0x366   : >> { %v1114_v41 = vpack.c.b16 %v1110_v39, %v1109_v12 }
 0x36b   : >> { %v3288_v8 = vpop.trf.xlu0 }
 0x36c   : >> { %v2767_v16 = vunpack.i.h.bf16 %v3288_v8 }
 0x36e   : >> { %v1024_v50 = vpack.c.bf16 %v2767_v16, %v2767_v16  ;;  %v2754_v16 = vunpack.i.l.bf16 %v3274_v59 }
 0x373   : >> { %v3296_v2 = vpop.trf.xlu0 }
 0x374   : >> { %2482 = vmatmul.msk.bf16.gmra.mxu2 %vm1049_vm9, %v1113_v38  ;;  %2491 = vmatmul.msk.bf16.gmra.mxu1 %vm1049_vm9, %v1242_v33 }
 0x37b   : >> { %v3306_v52 = vpop.trf.xlu0 }
 0x383   : >> { %v3316_v22 = vpop.trf.xlu0 }
 0x384   : >> { %2483 = vmatmul.msk.bf16.gmra.mxu2 %vm1049_vm9, %v1114_v41 }
 0x38b   : >> { %v3328_v43 = vpop.trf.xlu0 }
 0x391   : >> { %v3244_v44 = vpop.f32.mrf.mxu1 }
 0x392   : >> { %v1287_v45 = vsel %vm457_vm3, %v3244_v44, -inf }
 0x393   : >> { %1288 = vmax.xlane.f32.xlu1 %v1287_v45 }
 0x399   : >> { %v3248_v46 = vpop.f32.mrf.mxu1 }
 0x39a   : >> { %v1290_v38 = vsel %vm457_vm3, %v3248_v46, -inf }
 0x39b   : >> { %1291 = vmax.xlane.f32.xlu0 %v1290_v38 }
 0x39c   : >> { %v3252_v42 = vpop.f32.mrf.mxu3 }
 0x39d   : >> { %v1335_v49 = vsel %vm457_vm3, %v3252_v42, -inf }
 0x3a1   : >> { %v3254_v47 = vpop.f32.mrf.mxu1 }
 0x3a2   : >> { %v1293_v48 = vsel %vm457_vm3, %v3254_v47, -inf }
 0x3a3   : >> { %1294 = vmax.xlane.f32.xlu1 %v1293_v48 }
 0x3a4   : >> { %v3262_v53 = vpop.f32.mrf.mxu3 }
 0x3a5   : >> { %v1338_v60 = vsel %vm457_vm3, %v3262_v53, -inf }
 0x3a9   : >> { %v3260_v51 = vpop.f32.mrf.mxu1 }
 0x3aa   : >> { %v1296_v27 = vsel %vm457_vm3, %v3260_v51, -inf }
 0x3ab   : >> { %1336 = vmax.xlane.f32.xlu1 %v1335_v49 }
 0x3ac   : >> { %v3272_v40 = vpop.f32.mrf.mxu3 }
 0x3ad   : >> { %v1341_v32 = vsel %vm457_vm3, %v3272_v40, -inf }
 0x3b1   : >> { %v3266_v56 = vpop.f32.mrf.mxu1 }
 0x3b2   : >> { %v1299_v57 = vsel %vm457_vm3, %v3266_v56, -inf }
 0x3b3   : >> { %1297 = vmax.xlane.f32.xlu1 %v1296_v27  ;;  %1300 = vmax.xlane.f32.xlu2 %v1299_v57 }
 0x3b4   : >> { %v3282_v0 = vpop.f32.mrf.mxu3 }
 0x3b5   : >> { %v1344_v4 = vsel %vm457_vm3, %v3282_v0, -inf }
 0x3b9   : >> { %v3278_v61 = vpop.f32.mrf.mxu1 }
 0x3ba   : >> { %v1302_v41 = vsel %vm457_vm3, %v3278_v61, -inf }
 0x3bb   : >> { %1339 = vmax.xlane.f32.xlu1 %v1338_v60 }
 0x3bc   : >> { %v3304_v18 = vpop.f32.mrf.mxu3 }
 0x3bd   : >> { %v1347_v27 = vsel %vm457_vm3, %v3304_v18, -inf }
 0x3c1   : >> { %v3286_v6 = vpop.f32.mrf.mxu1 }
 0x3c2   : >> { %v1359_v10 = vsel %vm457_vm3, %v3286_v6, -inf }
 0x3c3   : >> { %1345 = vmax.xlane.f32.xlu1 %v1344_v4 }
 0x3c4   : >> { %v3318_v24 = vpop.f32.mrf.mxu3 }
 0x3c5   : >> { %v1350_v26 = vsel %vm457_vm3, %v3318_v24, -inf }
 0x3c7   : >> { %v3290_v9 = vpop.f32.mrf.mxu2 }
 0x3c8   : >> { %v1305_v17 = vsel %vm457_vm3, %v3290_v9, -inf }
 0x3c9   : >> { %v3294_v11 = vpop.f32.mrf.mxu1 }
 0x3ca   : >> { %v1362_v21 = vsel %vm457_vm3, %v3294_v11, -inf }
 0x3cb   : >> { %1360 = vmax.xlane.f32.xlu1 %v1359_v10 }
 0x3cc   : >> { %v3350_v39 = vpop.f32.mrf.mxu3 }
 0x3cf   : >> { %v3298_v14 = vpop.f32.mrf.mxu2 }
 0x3d1   : >> { %v3300_v15 = vpop.f32.mrf.mxu1 }
 0x3d2   : >> { %v1365_v35 = vsel %vm457_vm3, %v3300_v15, -inf }
 0x3d3   : >> { %1306 = vmax.xlane.f32.xlu1 %v1305_v17 }
 0x3d4   : >> { %v3362_v49 = vpop.f32.mrf.mxu3 }
 0x3d5   : >> { %3781 = vst [vmem:[#allocation7_spill] sm:$0xff] %v3362_v49  ;;  %v1356_v57 = vsel %vm457_vm3, %v3362_v49, -inf }
 0x3d7   : >> { %v3308_v7 = vpop.f32.mrf.mxu2 }
 0x3d8   : >> { %v1311_v19 = vsel %vm457_vm3, %v3308_v7, -inf }
 0x3d9   : >> { %1312 = vmax.xlane.f32.xlu2 %v1311_v19  ;;  %v3312_v20 = vpop.f32.mrf.mxu1 }
 0x3da   : >> { %v1368_v30 = vsel %vm457_vm3, %v3312_v20, -inf }
 0x3db   : >> { %1363 = vmax.xlane.f32.xlu1 %v1362_v21 }
 0x3df   : >> { %v3320_v25 = vpop.f32.mrf.mxu2 }
 0x3e0   : >> { %v1314_v33 = vsel %vm457_vm3, %v3320_v25, -inf }
 0x3e1   : >> { %v3324_v1 = vpop.f32.mrf.mxu1 }
 0x3e2   : >> { %v1371_v28 = vsel %vm457_vm3, %v3324_v1, -inf }
 0x3e3   : >> { %1351 = vmax.xlane.f32.xlu1 %v1350_v26  ;;  %1372 = vmax.xlane.f32.xlu2 %v1371_v28 }
 0x3e7   : >> { %v3330_v3 = vpop.f32.mrf.mxu2 }
 0x3e8   : >> { %v1317_v29 = vsel %vm457_vm3, %v3330_v3, -inf }
 0x3e9   : >> { %1318 = vmax.xlane.f32.xlu0 %v1317_v29  ;;  %v3348_v37 = vpop.f32.mrf.mxu1 }
 0x3ea   : >> { %v1374_v17 = vsel %vm457_vm3, %v3348_v37, -inf }
 0x3eb   : >> { %1369 = vmax.xlane.f32.xlu1 %v1368_v30  ;;  %v1353_v30 = vsel %vm457_vm3, %v3350_v39, -inf }
 0x3ef   : >> { %v3336_v31 = vpop.f32.mrf.mxu2 }
 0x3f0   : >> { %v1320_v36 = vsel %vm457_vm3, %v3336_v31, -inf }
 0x3f1   : >> { %1342 = vmax.xlane.f32.xlu0 %v1341_v32  ;;  %v3360_v48 = vpop.f32.mrf.mxu1 }
 0x3f3   : >> { %1315 = vmax.xlane.f32.xlu1 %v1314_v33 }
 0x3f7   : >> { %v3342_v34 = vpop.f32.mrf.mxu2 }
 0x3f8   : >> { %v1323_v38 = vsel %vm457_vm3, %v3342_v34, -inf }
 0x3f9   : >> { %1366 = vmax.xlane.f32.xlu0 %v1365_v35  ;;  %v3370_v4 = vpop.f32.mrf.mxu1 }
 0x3fa   : >> { %v1380_v19 = vsel %vm457_vm3, %v3370_v4, -inf }
 0x3fb   : >> { %1321 = vmax.xlane.f32.xlu1 %v1320_v36 }
 0x3ff   : >> { %v3352_v12 = vpop.f32.mrf.mxu2 }
 0x400   : >> { %v1326_v45 = vsel %vm457_vm3, %v3352_v12, -inf }
 0x401   : >> { %1303 = vmax.xlane.f32.xlu0 %v1302_v41  ;;  %1327 = vmax.xlane.f32.xlu2 %v1326_v45  ;;  %v1377_v41 = vsel %vm457_vm3, %v3360_v48, -inf }
 0x403   : >> { %1324 = vmax.xlane.f32.xlu1 %v1323_v38 }
 0x406   : >> { %v1289_v10 = vpop.xlane.xlu1 %1288 }
 0x407   : >> { %v3368_v60 = vpop.f32.mrf.mxu2  ;;  %v1383_v21 = vsub.f32 %v3244_v44, %v1289_v10 }
 0x409   : >> { %1348 = vmax.xlane.f32.xlu0 %v1347_v27  ;;  %v1415_v26 = vmul.f32 1.442695, %v1383_v21  ;;  %v2787_v27 = vunpack.i.h.bf16 %v3328_v43 }
 0x40b   : >> { %1357 = vmax.xlane.f32.xlu1 %v1356_v57  ;;  %2839 = vpow2.f32 %v1415_v26  ;;  %v1028_v21 = vpack.c.bf16 %v2787_v27, %v2787_v27 }
 0x40e   : >> { %v1292_v28 = vpop.xlane.xlu0 %1291 }
 0x40f   : >> { %v3381_v32 = vpop.f32.mrf.mxu2  ;;  %v1384_v33 = vsub.f32 %v3248_v46, %v1292_v28  ;;  %v2782_v46 = vunpack.i.h.bf16 %v3316_v22  ;;  %v2772_v28 = vunpack.i.h.bf16 %v3296_v2 }
 0x410   : >> { %v1332_v35 = vsel %vm457_vm3, %v3381_v32, -inf }
 0x411   : >> { %1375 = vmax.xlane.f32.xlu0 %v1374_v17  ;;  %v1417_v44 = vmul.f32 1.442695, %v1384_v33  ;;  %v3390_v45 = vpop.eup %2839  ;;  %v1329_v17 = vsel %vm457_vm3, %v3368_v60, -inf  ;;  %v2784_v33 = vunpack.i.l.bf16 %v3328_v43  ;;  %v2769_v43 = vunpack.i.l.bf16 %v3296_v2 }
 0x412   : >> { %v1479_v38 = vsel %vm457_vm3, %v3390_v45, 0.0  ;;  %v2759_v2 = vunpack.i.l.bf16 %v3280_v63  ;;  %v1014_v63 = vpack.c.bf16 %v2754_v16, %v2754_v16 }
 0x413   : >> { %1381 = vmax.xlane.f32.xlu1 %v1380_v19  ;;  %2841 = vpow2.f32 %v1417_v44  ;;  %v1027_v19 = vpack.c.bf16 %v2782_v46, %v2782_v46  ;;  %v1020_v46 = vpack.c.bf16 %v2784_v33, %v2784_v33  ;;  %v2757_v33 = vunpack.i.h.bf16 %v3274_v59 }
 0x414   : >> { %v1015_v49 = vpack.c.bf16 %v2759_v2, %v2759_v2 }
 0x415   : >> { %v1960_v44 = vunpack.c.l.b16 %v1027_v19  ;;  %v1876_v23 = vunpack.c.l.b16 %v1020_v46 }
 0x416   : >> { %v3377_v29 = vpop.xlane.xlu1 %1294 }
 0x419   : >> { %1354 = vmax.xlane.f32.xlu0 %v1353_v30  ;;  %v3398_v10 = vpop.eup %2841  ;;  %v2777_v30 = vunpack.i.h.bf16 %v3306_v52 }
 0x41a   : >> { %v1482_v26 = vsel %vm457_vm3, %v3398_v10, 0.0 }
 0x41b   : >> { %1333 = vmax.xlane.f32.xlu1 %v1332_v35  ;;  %v2779_v35 = vunpack.i.l.bf16 %v3316_v22 }
 0x41d   : >> { %v1019_v27 = vpack.c.bf16 %v2779_v35, %v2779_v35  ;;  %v1023_v35 = vpack.c.bf16 %v2762_v13, %v2762_v13  ;;  %v1957_v13 = vunpack.c.l.b16 %v1024_v50 }
 0x41e   : >> { %v3386_v36 = vpop.xlane.xlu1 %1336 }
 0x41f   : >> { %v1875_v62 = vunpack.c.l.b16 %v1019_v27 }
 0x421   : >> { %1378 = vmax.xlane.f32.xlu0 %v1377_v41  ;;  %v1961_v41 = vunpack.c.l.b16 %v1028_v21  ;;  %v1880_v55 = vpack.c.b16 %v1876_v23, %v1875_v62  ;;  %v1017_v21 = vpack.c.bf16 %v2769_v43, %v2769_v43 }
 0x423   : >> { %1480 = vadd.xlane.f32.xlu1 %v1479_v38  ;;  %v1965_v22 = vpack.c.b16 %v1961_v41, %v1960_v44  ;;  %1901 = vmatpush.bf16.msrb.mxu0 %v1880_v55  ;;  %v1021_v41 = vpack.c.bf16 %v2752_v58, %v2752_v58  ;;  %v1956_v55 = vunpack.c.l.b16 %v1023_v35 }
 0x425   : >> { %1986 = vmatpush.bf16.msra.mxu1 %v1965_v22  ;;  %v1963_v22 = vpack.c.b16 %v1957_v13, %v1956_v55 }
 0x426   : >> { %v3396_v57 = vpop.xlane.xlu1 %1297 }
 0x429   : >> { %1330 = vmax.xlane.f32.xlu0 %v1329_v17  ;;  %v1026_v17 = vpack.c.bf16 %v2777_v30, %v2777_v30  ;;  %v1873_v30 = vunpack.c.l.b16 %v1017_v21 }
 0x42a   : >> { %2705 = vxpose.xlu2.b32.start.end [1/1] (short) (narrow) %v2704_v5, 64  ;;  %v1025_v5 = vpack.c.bf16 %v2772_v28, %v2772_v28 }
 0x42b   : >> { %1483 = vadd.xlane.f32.xlu1 %v1482_v26  ;;  %v2774_v26 = vunpack.i.l.bf16 %v3306_v52  ;;  %v1959_v27 = vunpack.c.l.b16 %v1026_v17  ;;  %v2764_v52 = vunpack.i.l.bf16 %v3288_v8  ;;  %v1871_v8 = vunpack.c.l.b16 %v1015_v49 }
 0x42c   : >> { %v1958_v46 = vunpack.c.l.b16 %v1025_v5  ;;  %v2749_v5 = vunpack.i.l.bf16 %v3264_v54  ;;  %v3426_v54 = vpop.xlane.xlu2 %1300 }
 0x42d   : >> { %v1018_v19 = vpack.c.bf16 %v2774_v26, %v2774_v26  ;;  %v1022_v26 = vpack.c.bf16 %v2757_v33, %v2757_v33  ;;  %v1016_v43 = vpack.c.bf16 %v2764_v52, %v2764_v52  ;;  %v1954_v33 = vunpack.c.l.b16 %v1021_v41 }
 0x42e   : >> { %v3411_v38 = vpop.xlane.xlu1 %1339  ;;  %v1964_v44 = vpack.c.b16 %v1959_v27, %v1958_v46 }
 0x42f   : >> { %v1874_v28 = vunpack.c.l.b16 %v1018_v19  ;;  %v1872_v17 = vunpack.c.l.b16 %v1016_v43  ;;  %v1013_v19 = vpack.c.bf16 %v2749_v5, %v2749_v5  ;;  %v1400_v16 = vsub.f32 %v3262_v53, %v3411_v38 }
 0x430   : >> { %1987 = vmatpush.bf16.msra.mxu1 %v1964_v44  ;;  %v1385_v53 = vsub.f32 %v3254_v47, %v3377_v29 }
 0x431   : >> { %v1879_v23 = vpack.c.b16 %v1874_v28, %v1873_v30  ;;  %v1878_v21 = vpack.c.b16 %v1872_v17, %v1871_v8  ;;  %v1870_v28 = vunpack.c.l.b16 %v1014_v63  ;;  %v1869_v58 = vunpack.c.l.b16 %v1013_v19 }
 0x432   : >> { %v1955_v30 = vunpack.c.l.b16 %v1022_v26 }
 0x433   : >> { %1902 = vmatpush.bf16.msrb.mxu0 %v1879_v23  ;;  %v1877_v27 = vpack.c.b16 %v1870_v28, %v1869_v58 }
 0x434   : >> { %1988 = vmatpush.bf16.msra.mxu1 %v1963_v22  ;;  %v1962_v35 = vpack.c.b16 %v1955_v30, %v1954_v33  ;;  %v1386_v33 = vsub.f32 %v3260_v51, %v3396_v57 }
 0x436   : >> { %v3421_v62 = vpop.xlane.xlu1 %1345  ;;  %v1421_v47 = vmul.f32 1.442695, %v1386_v33 }
 0x437   : >> { %1903 = vmatpush.bf16.msrb.mxu0 %v1878_v21  ;;  %v1402_v57 = vsub.f32 %v3282_v0, %v3421_v62 }
 0x438   : >> { %1989 = vmatpush.bf16.msra.mxu1 %v1962_v35 }
 0x43b   : >> { %1904 = vmatpush.bf16.msrb.mxu0 %v1877_v27 }
 0x43e   : >> { %v1361_v46 = vpop.xlane.xlu1 %1360 }
 0x43f   : >> { %v1407_v50 = vsub.f32 %v3286_v6, %v1361_v46  ;;  %v1399_v6 = vsub.f32 %v3252_v42, %v3386_v36 }
 0x441   : >> { %v1463_v59 = vmul.f32 1.442695, %v1407_v50  ;;  %v1447_v43 = vmul.f32 1.442695, %v1399_v6 }
 0x443   : >> { %2843 = vpow2.f32 %v1463_v59 }
 0x446   : >> { %v3428_v49 = vpop.xlane.xlu1 %1306 }
 0x449   : >> { %v3430_v52 = vpop.eup %2843 }
 0x44a   : >> { %v1551_v2 = vsel %vm457_vm3, %v3430_v52, 0.0 }
 0x44b   : >> { %1552 = vadd.xlane.f32.xlu0 %v1551_v2 }
 0x44c   : >> { %v1313_v23 = vpop.xlane.xlu2 %1312 }
 0x44d   : >> { %v1391_v44 = vsub.f32 %v3308_v7, %v1313_v23  ;;  %v1449_v7 = vmul.f32 1.442695, %v1400_v16 }
 0x44e   : >> { %v1364_v41 = vpop.xlane.xlu1 %1363 }
 0x44f   : >> { %v1431_v26 = vmul.f32 1.442695, %v1391_v44  ;;  %v1408_v42 = vsub.f32 %v3294_v11, %v1364_v41  ;;  %v1419_v11 = vmul.f32 1.442695, %v1385_v53  ;;  %v1453_v44 = vmul.f32 1.442695, %v1402_v57 }
 0x450   : >> { %v1387_v53 = vsub.f32 %v3266_v56, %v3426_v54 }
 0x451   : >> { %2845 = vpow2.f32 %v1431_v26  ;;  %v1465_v22 = vmul.f32 1.442695, %v1408_v42 }
 0x452   : >> { %2847 = vpow2.f32 %v1447_v43 }
 0x453   : >> { %2849 = vpow2.f32 %v1449_v7 }
 0x454   : >> { %2851 = vpow2.f32 %v1465_v22 }
 0x455   : >> { %2853 = vpow2.f32 %v1419_v11 }
 0x456   : >> { %v3437_v55 = vpop.xlane.xlu1 %1351  ;;  %2855 = vpow2.f32 %v1421_v47 }
 0x457   : >> { %v3439_v13 = vpop.eup %2845 }
 0x458   : >> { %v1503_v5 = vsel %vm457_vm3, %v3439_v13, 0.0  ;;  %v3445_v17 = vpop.eup %2847 }
 0x459   : >> { %1504 = vadd.xlane.f32.xlu1 %v1503_v5  ;;  %v1527_v36 = vsel %vm457_vm3, %v3445_v17, 0.0  ;;  %v3450_v63 = vpop.eup %2849 }
 0x45a   : >> { %v1530_v38 = vsel %vm457_vm3, %v3450_v63, 0.0  ;;  %v3460_v28 = vpop.eup %2851 }
 0x45b   : >> { %v1554_v30 = vsel %vm457_vm3, %v3460_v28, 0.0  ;;  %v3468_v46 = vpop.eup %2853 }
 0x45c   : >> { %v3458_v21 = vpop.xlane.xlu0 %1318  ;;  %v1485_v50 = vsel %vm457_vm3, %v3468_v46, 0.0  ;;  %v3475_v2 = vpop.eup %2855 }
 0x45d   : >> { %v1488_v23 = vsel %vm457_vm3, %v3475_v2, 0.0 }
 0x45e   : >> { %v1370_v8 = vpop.xlane.xlu1 %1369 }
 0x45f   : >> { %v1410_v7 = vsub.f32 %v3312_v20, %v1370_v8 }
 0x461   : >> { %1528 = vadd.xlane.f32.xlu1 %v1527_v36 }
 0x464   : >> { %v1343_v29 = vpop.xlane.xlu0 %1342 }
 0x465   : >> { %v1401_v35 = vsub.f32 %v3272_v40, %v1343_v29 }
 0x466   : >> { %v3452_v19 = vpop.xlane.xlu1 %1315 }
 0x467   : >> { %v1451_v59 = vmul.f32 1.442695, %v1401_v35 }
 0x469   : >> { %1531 = vadd.xlane.f32.xlu1 %v1530_v38  ;;  %2857 = vpow2.f32 %v1451_v59  ;;  %v1423_v38 = vmul.f32 1.442695, %v1387_v53  ;;  %v1393_v53 = vsub.f32 %v3330_v3, %v3458_v21 }
 0x46a   : >> { %2859 = vpow2.f32 %v1453_v44 }
 0x46c   : >> { %v1367_v41 = vpop.xlane.xlu0 %1366 }
 0x46d   : >> { %v1409_v26 = vsub.f32 %v3300_v15, %v1367_v41  ;;  %v1373_v41 = vpop.xlane.xlu2 %1372 }
 0x46e   : >> { %v3462_v58 = vpop.xlane.xlu1 %1321 }
 0x46f   : >> { %v3483_v40 = vpop.eup %2857  ;;  %v1467_v0 = vmul.f32 1.442695, %v1409_v26  ;;  %v1389_v26 = vsub.f32 %v3290_v9, %v3428_v49 }
 0x470   : >> { %v1533_v16 = vsel %vm457_vm3, %v3483_v40, 0.0  ;;  %v3489_v62 = vpop.eup %2859 }
 0x471   : >> { %1555 = vadd.xlane.f32.xlu1 %v1554_v30  ;;  %v1536_v42 = vsel %vm457_vm3, %v3489_v62, 0.0 }
 0x474   : >> { %v1304_v8 = vpop.xlane.xlu0 %1303 }
 0x475   : >> { %v1388_v33 = vsub.f32 %v3278_v61, %v1304_v8  ;;  %v1404_v61 = vsub.f32 %v3318_v24, %v3437_v55  ;;  %v1427_v55 = vmul.f32 1.442695, %v1389_v26 }
 0x476   : >> { %v3470_v27 = vpop.xlane.xlu1 %1324 }
 0x477   : >> { %v1425_v47 = vmul.f32 1.442695, %v1388_v33  ;;  %v1457_v44 = vmul.f32 1.442695, %v1404_v61 }
 0x479   : >> { %1486 = vadd.xlane.f32.xlu1 %v1485_v50 }
 0x47c   : >> { %v1349_v29 = vpop.xlane.xlu0 %1348 }
 0x47d   : >> { %v1403_v56 = vsub.f32 %v3304_v18, %v1349_v29 }
 0x47e   : >> { %v3477_v51 = vpop.xlane.xlu1 %1357 }
 0x47f   : >> { %v1455_v50 = vmul.f32 1.442695, %v1403_v56 }
 0x481   : >> { %1489 = vadd.xlane.f32.xlu1 %v1488_v23 }
 0x486   : >> { %v1382_v6 = vpop.xlane.xlu1 %1381 }
 0x487   : >> { %v1414_v43 = vsub.f32 %v3370_v4, %v1382_v6  ;;  %v1469_v4 = vmul.f32 1.442695, %v1410_v7  ;;  %v1376_v6 = vpop.xlane.xlu0 %1375 }
 0x488   : >> { %v1412_v56 = vsub.f32 %v3348_v37, %v1376_v6 }
 0x489   : >> { %v1477_v5 = vmul.f32 1.442695, %v1414_v43  ;;  %1534 = vadd.xlane.f32.xlu1 %v1533_v16  ;;  %v3530_v16 = vpop.xlane.xlu2 %1327 }
 0x48b   : >> { %2861 = vpow2.f32 %v1477_v5 }
 0x48c   : >> { %2863 = vpow2.f32 %v1467_v0  ;;  %v1411_v0 = vsub.f32 %v3324_v1, %v1373_v41  ;;  %v1392_v1 = vsub.f32 %v3320_v25, %v3452_v19  ;;  %v1473_v25 = vmul.f32 1.442695, %v1412_v56 }
 0x48d   : >> { %2865 = vpow2.f32 %v1469_v4  ;;  %v1308_v19 = vsel %vm457_vm3, %v3298_v14, -inf }
 0x48e   : >> { %2867 = vpow2.f32 %v1423_v38  ;;  %v3518_v57 = vpop.xlane.xlu1 %1333  ;;  %v1471_v9 = vmul.f32 1.442695, %v1411_v0  ;;  %v1435_v38 = vmul.f32 1.442695, %v1393_v53  ;;  %v1433_v29 = vmul.f32 1.442695, %v1392_v1 }
 0x48f   : >> { %2869 = vpow2.f32 %v1425_v47  ;;  %v1355_v7 = vpop.xlane.xlu0 %1354 }
 0x490   : >> { %2871 = vpow2.f32 %v1455_v50  ;;  %v1405_v21 = vsub.f32 %v3350_v39, %v1355_v7 }
 0x491   : >> { %v3494_v36 = vpop.eup %2861  ;;  %1537 = vadd.xlane.f32.xlu1 %v1536_v42  ;;  %2873 = vpow2.f32 %v1457_v44  ;;  %v1394_v44 = vsub.f32 %v3336_v31, %v3462_v58 }
 0x492   : >> { %v1572_v15 = vsel %vm457_vm3, %v3494_v36, 0.0  ;;  %v3498_v22 = vpop.eup %2863  ;;  %2875 = vpow2.f32 %v1427_v55  ;;  %v1459_v37 = vmul.f32 1.442695, %v1405_v21 }
 0x493   : >> { %1573 = vadd.xlane.f32.xlu0 %v1572_v15  ;;  %v1557_v20 = vsel %vm457_vm3, %v3498_v22, 0.0  ;;  %v3504_v11 = vpop.eup %2865  ;;  %2877 = vpow2.f32 %v1471_v9  ;;  %v1437_v26 = vmul.f32 1.442695, %v1394_v44 }
 0x494   : >> { %v1560_v30 = vsel %vm457_vm3, %v3504_v11, 0.0  ;;  %v3509_v35 = vpop.eup %2867  ;;  %2879 = vpow2.f32 %v1435_v38 }
 0x495   : >> { %v1491_v54 = vsel %vm457_vm3, %v3509_v35, 0.0  ;;  %v3514_v59 = vpop.eup %2869  ;;  %2881 = vpow2.f32 %v1433_v29 }
 0x496   : >> { %v1494_v23 = vsel %vm457_vm3, %v3514_v59, 0.0  ;;  %v3522_v18 = vpop.eup %2871  ;;  %v3528_v24 = vpop.xlane.xlu1 %1480  ;;  %2883 = vpow2.f32 %v1473_v25 }
 0x497   : >> { %v1539_v43 = vsel %vm457_vm3, %v3522_v18, 0.0  ;;  %v3532_v5 = vpop.eup %2873  ;;  %v1379_v8 = vpop.xlane.xlu0 %1378 }
 0x498   : >> { %v1542_v42 = vsel %vm457_vm3, %v3532_v5, 0.0  ;;  %v3541_v4 = vpop.eup %2875  ;;  %v1413_v1 = vsub.f32 %v3360_v48, %v1379_v8 }
 0x499   : >> { %1558 = vadd.xlane.f32.xlu1 %v1557_v20  ;;  %3782 = vst [vmem:[#allocation8_spill] sm:$0xff] %v3541_v4  ;;  %v1497_v20 = vsel %vm457_vm3, %v3541_v4, 0.0  ;;  %v3553_v47 = vpop.eup %2877 }
 0x49a   : >> { %v1563_v3 = vsel %vm457_vm3, %v3553_v47, 0.0 }
 0x49e   : >> { %v3539_v15 = vpop.xlane.xlu1 %1483 }
 0x49f   : >> { %v1331_v50 = vpop.xlane.xlu0 %1330 }
 0x4a0   : >> { %v1397_v6 = vsub.f32 %v3368_v60, %v1331_v50  ;;  %v1395_v60 = vsub.f32 %v3342_v34, %v3470_v27  ;;  %v1396_v50 = vsub.f32 %v3352_v12, %v3530_v16 }
 0x4a1   : >> { %1561 = vadd.xlane.f32.xlu1 %v1560_v30 }
 0x4a2   : >> { %v1439_v56 = vmul.f32 1.442695, %v1395_v60 }
 0x4a9   : >> { %1492 = vadd.xlane.f32.xlu1 %v1491_v54 }
 0x4b1   : >> { %1495 = vadd.xlane.f32.xlu1 %v1494_v23  ;;  %v3563_v23 = vpop.eup %2879 }
 0x4b2   : >> { %v3567_v41 = vpop.eup %2881  ;;  %v1509_v39 = vsel %vm457_vm3, %v3563_v23, 0.0 }
 0x4b3   : >> { %v3576_v0 = vpop.eup %2883 }
 0x4b9   : >> { %1540 = vadd.xlane.f32.xlu1 %v1539_v43  ;;  %v1506_v43 = vsel %vm457_vm3, %v3567_v41, 0.0 }
 0x4be   : >> { %v1553_v31 = vpop.xlane.xlu0 %1552 }
 0x4c1   : >> { %1543 = vadd.xlane.f32.xlu1 %v1542_v42  ;;  %v1443_v42 = vmul.f32 1.442695, %v1397_v6 }
 0x4c3   : >> { %v3537_v49 = vpop.trf.xlu2 }
 0x4c9   : >> { %1498 = vadd.xlane.f32.xlu1 %v1497_v20  ;;  %v1566_v20 = vsel %vm457_vm3, %v3576_v0, 0.0 }
 0x4cb   : >> { %v3549_v33 = vpop.trf.xlu2 }
 0x4cc   : >> { %v3551_v30 = vpop.xlane.xlu1 %1504 }
 0x4d1   : >> { %1564 = vadd.xlane.f32.xlu1 %v1563_v3 }
 0x4d3   : >> { %1309 = vmax.xlane.f32.xlu2 %v1308_v19  ;;  %v3561_v54 = vpop.trf.xlu2  ;;  %v1475_v19 = vmul.f32 1.442695, %v1413_v1 }
 0x4d4   : >> { %v1529_v61 = vpop.xlane.xlu1 %1528 }
 0x4d5   : >> { %2885 = vrcp.f32 %v1529_v61 }
 0x4d6   : >> { %2887 = vpow2.f32 %v1459_v37 }
 0x4d9   : >> { %1510 = vadd.xlane.f32.xlu1 %v1509_v39 }
 0x4db   : >> { %1507 = vadd.xlane.f32.xlu2 %v1506_v43  ;;  %v3574_v55 = vpop.trf.xlu2  ;;  %v2886_v7 = vpop.eup %2885  ;;  %v1441_v43 = vmul.f32 1.442695, %v1396_v50 }
 0x4dc   : >> { %v1532_v58 = vpop.xlane.xlu1 %1531  ;;  %v3578_v9 = vpop.eup %2887  ;;  %v1623_v53 = vmul.f32 %v2886_v7, %v3445_v17 }
 0x4dd   : >> { %2889 = vrcp.f32 %v1532_v58  ;;  %3783 = vst [vmem:[#allocation9_spill] sm:$0xff] %v3578_v9  ;;  %v1545_v38 = vsel %vm457_vm3, %v3578_v9, 0.0 }
 0x4de   : >> { %2891 = vpow2.f32 %v1437_v26  ;;  %v1655_v34 = vpack.c.bf16 %v1623_v53, %v1623_v53 }
 0x4df   : >> { %2893 = vrcp.f32 %v1553_v31 }
 0x4e0   : >> { %2895 = vpow2.f32 %v1443_v42  ;;  %v1849_v37 = vunpack.c.l.b16 %v1655_v34 }
 0x4e1   : >> { %1567 = vadd.xlane.f32.xlu1 %v1566_v20 }
 0x4e3   : >> { %v2890_v29 = vpop.eup %2889  ;;  %v3588_v3 = vpop.trf.xlu2  ;;  %1546 = vadd.xlane.f32.xlu2 %v1545_v38 }
 0x4e4   : >> { %v3590_v21 = vpop.eup %2891  ;;  %v1624_v17 = vmul.f32 %v2890_v29, %v3450_v63  ;;  %v1556_v27 = vpop.xlane.xlu1 %1555  ;;  %v2727_v34 = vunpack.i.l.bf16 %v3588_v3  ;;  %v2730_v50 = vunpack.i.h.bf16 %v3588_v3 }
 0x4e5   : >> { %v2894_v25 = vpop.eup %2893  ;;  %2897 = vrcp.f32 %v1556_v27  ;;  %v1512_v39 = vsel %vm457_vm3, %v3590_v21, 0.0 }
 0x4e6   : >> { %v1656_v48 = vpack.c.bf16 %v1624_v17, %v1624_v17  ;;  %v3593_v8 = vpop.eup %2895  ;;  %2899 = vpow2.f32 %v1439_v56  ;;  %v1631_v61 = vmul.f32 %v2894_v25, %v3430_v52  ;;  %v2717_v25 = vunpack.i.l.bf16 %v3561_v54 }
 0x4e7   : >> { %3784 = vst [vmem:[#allocation10_spill] sm:$0xff] %v3593_v8  ;;  %2901 = vpow2.f32 %v1475_v19  ;;  %v1521_v63 = vsel %vm457_vm3, %v3593_v8, 0.0 }
 0x4e8   : >> { %v1850_v44 = vunpack.c.l.b16 %v1656_v48  ;;  %v1663_v58 = vpack.c.bf16 %v1631_v61, %v1631_v61  ;;  %2903 = vpow2.f32 %v1441_v43  ;;  %v999_v3 = vpack.c.bf16 %v2717_v25, %v2717_v25 }
 0x4e9   : >> { %1513 = vadd.xlane.f32.xlu1 %v1512_v39  ;;  %2905 = vrcp.f32 %v3528_v24  ;;  %v2725_v39 = vunpack.i.h.bf16 %v3574_v55  ;;  %v2720_v24 = vunpack.i.h.bf16 %v3561_v54  ;;  %v2710_v25 = vunpack.i.h.bf16 %v3537_v49 }
 0x4ea   : >> { %v1857_v6 = vpack.c.b16 %v1850_v44, %v1849_v37  ;;  %v1934_v60 = vunpack.c.l.b16 %v1663_v58  ;;  %2907 = vrcp.f32 %v3539_v15  ;;  %v2722_v37 = vunpack.i.l.bf16 %v3574_v55 }
 0x4eb   : >> { %v2898_v26 = vpop.eup %2897  ;;  %v2731_v31 = vpop.trf.xlu2  ;;  %1522 = vadd.xlane.f32.xlu2 %v1521_v63  ;;  %v1001_v44 = vpack.c.bf16 %v2727_v34, %v2727_v34  ;;  %v2707_v63 = vunpack.i.l.bf16 %v3537_v49  ;;  %v1008_v55 = vpack.c.bf16 %v2725_v39, %v2725_v39 }
 0x4ec   : >> { %v1632_v12 = vmul.f32 %v2898_v26, %v3460_v28  ;;  %2500 = vmatmul.msk.bf16.vlgmr.msrb.gmra.mxu0 %vm457_vm3, %v1857_v6  ;;  %v3604_v52 = vpop.xlane.xlu1 %1486  ;;  %v3606_v16 = vpop.eup %2899  ;;  %v2732_v19 = vunpack.i.l.bf16 %v2731_v31  ;;  %v2735_v48 = vunpack.i.h.bf16 %v2731_v31  ;;  %v2712_v6 = vunpack.i.l.bf16 %v3549_v33 }
 0x4ed   : >> { %v3608_v42 = vpop.eup %2901  ;;  %v1515_v20 = vsel %vm457_vm3, %v3606_v16, 0.0 }
 0x4ee   : >> { %v1664_v7 = vpack.c.bf16 %v1632_v12, %v1632_v12  ;;  %v1569_v28 = vsel %vm457_vm3, %v3608_v42, 0.0  ;;  %v3617_v56 = vpop.eup %2903  ;;  %v1002_v31 = vpack.c.bf16 %v2732_v19, %v2732_v19  ;;  %v1010_v58 = vpack.c.bf16 %v2735_v48, %v2735_v48 }
 0x4ef   : >> { %3785 = vst [vmem:[#allocation11_spill] sm:$0xff] %v3617_v56  ;;  %v1518_v61 = vsel %vm457_vm3, %v3617_v56, 0.0  ;;  %v1009_v12 = vpack.c.bf16 %v2730_v50, %v2730_v50 }
 0x4f0   : >> { %v1935_v53 = vunpack.c.l.b16 %v1664_v7  ;;  %v2906_v7 = vpop.eup %2905  ;;  %v1704_v50 = vunpack.c.l.b16 %v1002_v31  ;;  %v1789_v4 = vunpack.c.l.b16 %v1010_v58 }
 0x4f1   : >> { %1516 = vadd.xlane.f32.xlu1 %v1515_v20  ;;  %v2908_v54 = vpop.eup %2907 }
 0x4f2   : >> { %v1942_v1 = vpack.c.b16 %v1935_v53, %v1934_v60 }
 0x4f3   : >> { %v2736_v38 = vpop.trf.xlu2  ;;  %1570 = vadd.xlane.f32.xlu2 %v1569_v28  ;;  %v1703_v28 = vunpack.c.l.b16 %v1001_v44 }
 0x4f4   : >> { %2504 = vmatmul.msk.bf16.vlgmr.msra.gmra.mxu1 %vm457_vm3, %v1942_v1  ;;  %v3615_v29 = vpop.xlane.xlu1 %1489  ;;  %v2737_v17 = vunpack.i.l.bf16 %v2736_v38  ;;  %v2740_v27 = vunpack.i.h.bf16 %v2736_v38  ;;  %v1000_v1 = vpack.c.bf16 %v2722_v37, %v2722_v37  ;;  %v1007_v38 = vpack.c.bf16 %v2720_v24, %v2720_v24 }
 0x4f5   : >> { %v998_v37 = vpack.c.bf16 %v2712_v6, %v2712_v6  ;;  %v1701_v24 = vunpack.c.l.b16 %v999_v3 }
 0x4f6   : >> { %v1003_v26 = vpack.c.bf16 %v2737_v17, %v2737_v17  ;;  %v1011_v43 = vpack.c.bf16 %v2740_v27, %v2740_v27  ;;  %v1788_v17 = vunpack.c.l.b16 %v1009_v12  ;;  %v2715_v27 = vunpack.i.h.bf16 %v3549_v33 }
 0x4f7   : >> { %v1702_v56 = vunpack.c.l.b16 %v1000_v1  ;;  %v1709_v12 = vpack.c.b16 %v1704_v50, %v1703_v28  ;;  %v1786_v33 = vunpack.c.l.b16 %v1007_v38 }
 0x4f8   : >> { %v1705_v34 = vunpack.c.l.b16 %v1003_v26  ;;  %v1790_v8 = vunpack.c.l.b16 %v1011_v43  ;;  %v1787_v26 = vunpack.c.l.b16 %v1008_v55 }
 0x4f9   : >> { %1519 = vadd.xlane.f32.xlu1 %v1518_v61  ;;  %v1708_v6 = vpack.c.b16 %v1702_v56, %v1701_v24 }
 0x4fa   : >> { %v1793_v3 = vpack.c.b16 %v1787_v26, %v1786_v33 }
 0x4fb   : >> { %v2741_v15 = vpop.trf.xlu2 }
 0x4fc   : >> { %v2742_v60 = vunpack.i.l.bf16 %v2741_v15  ;;  %v1535_v53 = vpop.xlane.xlu1 %1534  ;;  %v2745_v20 = vunpack.i.h.bf16 %v2741_v15  ;;  %v997_v15 = vpack.c.bf16 %v2707_v63, %v2707_v63  ;;  %v1607_v63 = vmul.f32 %v2906_v7, %v3390_v45 }
 0x4fd   : >> { %2909 = vrcp.f32 %v1535_v53  ;;  %v1794_v53 = vpack.c.b16 %v1789_v4, %v1788_v17 }
 0x4fe   : >> { %v1004_v61 = vpack.c.bf16 %v2742_v60, %v2742_v60  ;;  %v1012_v9 = vpack.c.bf16 %v2745_v20, %v2745_v20  ;;  %v1006_v60 = vpack.c.bf16 %v2715_v27, %v2715_v27  ;;  %v1005_v20 = vpack.c.bf16 %v2710_v25, %v2710_v25 }
 0x4ff   : >> { %v1699_v31 = vunpack.c.l.b16 %v997_v15  ;;  %v1639_v38 = vpack.c.bf16 %v1607_v63, %v1607_v63 }
 0x500   : >> { %v1706_v19 = vunpack.c.l.b16 %v1004_v61  ;;  %v1791_v48 = vunpack.c.l.b16 %v1012_v9  ;;  %v1608_v9 = vmul.f32 %v2908_v54, %v3398_v10  ;;  %v1785_v58 = vunpack.c.l.b16 %v1006_v60 }
 0x501   : >> { %v1784_v1 = vunpack.c.l.b16 %v1005_v20  ;;  %v1679_v17 = vunpack.c.l.b16 %v1639_v38 }
 0x502   : >> { %v1710_v44 = vpack.c.b16 %v1706_v19, %v1705_v34  ;;  %v1795_v39 = vpack.c.b16 %v1791_v48, %v1790_v8  ;;  %v1700_v8 = vunpack.c.l.b16 %v998_v37  ;;  %v1640_v28 = vpack.c.bf16 %v1608_v9, %v1608_v9 }
 0x503   : >> { %v2910_v49 = vpop.eup %2909  ;;  %v1792_v45 = vpack.c.b16 %v1785_v58, %v1784_v1 }
 0x504   : >> { %1731 = vmatpush.bf16.msra.mxu2 %v1710_v44  ;;  %1816 = vmatpush.bf16.msrb.mxu3 %v1795_v39  ;;  %v1538_v43 = vpop.xlane.xlu1 %1537  ;;  %v1625_v55 = vmul.f32 %v2910_v49, %v3483_v40  ;;  %v1707_v34 = vpack.c.b16 %v1700_v8, %v1699_v31  ;;  %v1680_v54 = vunpack.c.l.b16 %v1640_v28 }
 0x505   : >> { %2911 = vrcp.f32 %v1538_v43 }
 0x506   : >> { %2913 = vrcp.f32 %v3615_v29  ;;  %v1657_v7 = vpack.c.bf16 %v1625_v55, %v1625_v55  ;;  %v1687_v25 = vpack.c.b16 %v1680_v54, %v1679_v17 }
 0x507   : >> { %2915 = vrcp.f32 %v3604_v52 }
 0x508   : >> { %1732 = vmatpush.bf16.msra.mxu2 %v1709_v12  ;;  %1817 = vmatpush.bf16.msrb.mxu3 %v1794_v53  ;;  %v1851_v40 = vunpack.c.l.b16 %v1657_v7 }
 0x50b   : >> { %v2912_v4 = vpop.eup %2911 }
 0x50c   : >> { %1733 = vmatpush.bf16.msra.mxu2 %v1708_v6  ;;  %1818 = vmatpush.bf16.msrb.mxu3 %v1793_v3  ;;  %v1559_v10 = vpop.xlane.xlu1 %1558  ;;  %v1626_v56 = vmul.f32 %v2912_v4, %v3489_v62  ;;  %v2914_v19 = vpop.eup %2913 }
 0x50d   : >> { %2917 = vrcp.f32 %v1559_v10  ;;  %v2916_v48 = vpop.eup %2915  ;;  %v1610_v52 = vmul.f32 %v2914_v19, %v3475_v2 }
 0x50e   : >> { %v1658_v61 = vpack.c.bf16 %v1626_v56, %v1626_v56  ;;  %v1609_v15 = vmul.f32 %v2916_v48, %v3468_v46  ;;  %v3786_v48 = vld [vmem:[#allocation7_spill] sm:$0xff] }
 0x50f   : >> { %v1642_v44 = vpack.c.bf16 %v1610_v52, %v1610_v52 }
 0x510   : >> { %1734 = vmatpush.bf16.msra.mxu2 %v1707_v34  ;;  %1819 = vmatpush.bf16.msrb.mxu3 %v1792_v45  ;;  %v1852_v27 = vunpack.c.l.b16 %v1658_v61  ;;  %v1641_v24 = vpack.c.bf16 %v1609_v15, %v1609_v15 }
 0x511   : >> { %v1682_v12 = vunpack.c.l.b16 %v1642_v44 }
 0x512   : >> { %v1858_v29 = vpack.c.b16 %v1852_v27, %v1851_v40  ;;  %v1681_v33 = vunpack.c.l.b16 %v1641_v24  ;;  %v1398_v27 = vsub.f32 %v3381_v32, %v3518_v57 }
 0x513   : >> { %2492 = vmatmul.msk.bf16.vlgmr.msra.gmra.mxu2 %vm457_vm3, %v1687_v25  ;;  %v2918_v50 = vpop.eup %2917 }
 0x514   : >> { %2501 = vmatmul.msk.bf16.gmra.mxu0 %vm457_vm3, %v1858_v29  ;;  %v1562_v62 = vpop.xlane.xlu1 %1561  ;;  %v1633_v37 = vmul.f32 %v2918_v50, %v3498_v22  ;;  %v1688_v9 = vpack.c.b16 %v1682_v12, %v1681_v33 }
 0x515   : >> { %2919 = vrcp.f32 %v1562_v62  ;;  %v1406_v62 = vsub.f32 %v3786_v48, %v3477_v51 }
 0x516   : >> { %v1665_v43 = vpack.c.bf16 %v1633_v37, %v1633_v37 }
 0x518   : >> { %v1936_v20 = vunpack.c.l.b16 %v1665_v43 }
 0x51b   : >> { %v2920_v39 = vpop.eup %2919 }
 0x51c   : >> { %v1493_v26 = vpop.xlane.xlu1 %1492  ;;  %v1634_v60 = vmul.f32 %v2920_v39, %v3504_v11 }
 0x51d   : >> { %2921 = vrcp.f32 %v1493_v26 }
 0x51e   : >> { %v1666_v53 = vpack.c.bf16 %v1634_v60, %v1634_v60 }
 0x520   : >> { %v1937_v49 = vunpack.c.l.b16 %v1666_v53 }
 0x522   : >> { %v1943_v63 = vpack.c.b16 %v1937_v49, %v1936_v20 }
 0x523   : >> { %2493 = vmatmul.msk.bf16.gmra.mxu2 %vm457_vm3, %v1688_v9  ;;  %v2922_v2 = vpop.eup %2921  ;;  %v1574_v9 = vpop.xlane.xlu0 %1573 }
 0x524   : >> { %2505 = vmatmul.msk.bf16.gmra.mxu1 %vm457_vm3, %v1943_v63  ;;  %v1496_v46 = vpop.xlane.xlu1 %1495  ;;  %v1611_v22 = vmul.f32 %v2922_v2, %v3509_v35 }
 0x525   : >> { %2923 = vrcp.f32 %v1496_v46 }
 0x526   : >> { %v1643_v8 = vpack.c.bf16 %v1611_v22, %v1611_v22 }
 0x528   : >> { %v1683_v58 = vunpack.c.l.b16 %v1643_v8 }
 0x52b   : >> { %v2924_v6 = vpop.eup %2923 }
 0x52c   : >> { %v1541_v11 = vpop.xlane.xlu1 %1540  ;;  %v1612_v31 = vmul.f32 %v2924_v6, %v3514_v59 }
 0x52d   : >> { %2925 = vrcp.f32 %v1541_v11 }
 0x52e   : >> { %v1644_v3 = vpack.c.bf16 %v1612_v31, %v1612_v31 }
 0x530   : >> { %v1684_v1 = vunpack.c.l.b16 %v1644_v3 }
 0x532   : >> { %v1689_v55 = vpack.c.b16 %v1684_v1, %v1683_v58 }
 0x533   : >> { %v2926_v4 = vpop.eup %2925 }
 0x534   : >> { %2494 = vmatmul.msk.bf16.gmra.mxu2 %vm457_vm3, %v1689_v55  ;;  %v1544_v28 = vpop.xlane.xlu1 %1543  ;;  %v1627_v38 = vmul.f32 %v2926_v4, %v3522_v18 }
 0x535   : >> { %2927 = vrcp.f32 %v1544_v28 }
 0x536   : >> { %v1659_v45 = vpack.c.bf16 %v1627_v38, %v1627_v38  ;;  %2929 = vrcp.f32 %v3551_v30  ;;  %v1461_v30 = vmul.f32 1.442695, %v1406_v62 }
 0x538   : >> { %v1853_v56 = vunpack.c.l.b16 %v1659_v45 }
 0x53b   : >> { %v2928_v34 = vpop.eup %2927 }
 0x53c   : >> { %v3651_v10 = vpop.xlane.xlu1 %1498  ;;  %v1628_v35 = vmul.f32 %v2928_v34, %v3532_v5  ;;  %v1445_v5 = vmul.f32 1.442695, %v1398_v27  ;;  %v2930_v29 = vpop.eup %2929 }
 0x53e   : >> { %v1660_v59 = vpack.c.bf16 %v1628_v35, %v1628_v35 }
 0x540   : >> { %v1854_v7 = vunpack.c.l.b16 %v1660_v59 }
 0x542   : >> { %v1859_v54 = vpack.c.b16 %v1854_v7, %v1853_v56 }
 0x544   : >> { %2502 = vmatmul.msk.bf16.gmra.mxu0 %vm457_vm3, %v1859_v54  ;;  %v1565_v61 = vpop.xlane.xlu1 %1564 }
 0x546   : >> { %v1310_v17 = vpop.xlane.xlu2 %1309 }
 0x547   : >> { %v1390_v40 = vsub.f32 %v3298_v14, %v1310_v17  ;;  %v1615_v14 = vmul.f32 %v2930_v29, %v3439_v13 }
 0x549   : >> { %v1429_v18 = vmul.f32 1.442695, %v1390_v40  ;;  %v1647_v37 = vpack.c.bf16 %v1615_v14, %v1615_v14 }
 0x54b   : >> { %2931 = vpow2.f32 %v1429_v18  ;;  %v1764_v26 = vunpack.c.l.b16 %v1647_v37  ;;  %v3787_v18 = vld [vmem:[#allocation11_spill] sm:$0xff] }
 0x54c   : >> { %v1511_v25 = vpop.xlane.xlu1 %1510  ;;  %2933 = vrcp.f32 %v1565_v61 }
 0x54e   : >> { %v1508_v19 = vpop.xlane.xlu2 %1507 }
 0x54f   : >> { %2935 = vrcp.f32 %v1508_v19 }
 0x550   : >> { %2937 = vpow2.f32 %v1445_v5 }
 0x551   : >> { %v3661_v50 = vpop.eup %2931 }
 0x552   : >> { %v1500_v32 = vsel %vm457_vm3, %v3661_v50, 0.0  ;;  %v2934_v57 = vpop.eup %2933 }
 0x553   : >> { %1501 = vadd.xlane.f32.xlu1 %v1500_v32  ;;  %v1635_v13 = vmul.f32 %v2934_v57, %v3553_v47 }
 0x554   : >> { %v1568_v52 = vpop.xlane.xlu1 %1567 }
 0x555   : >> { %v2936_v15 = vpop.eup %2935  ;;  %2939 = vrcp.f32 %v1568_v52  ;;  %v1667_v20 = vpack.c.bf16 %v1635_v13, %v1635_v13 }
 0x556   : >> { %v1616_v44 = vmul.f32 %v2936_v15, %v3567_v41  ;;  %v3667_v39 = vpop.xlane.xlu2 %1546  ;;  %v3669_v51 = vpop.eup %2937  ;;  %2941 = vpow2.f32 %v1461_v30 }
 0x557   : >> { %2943 = vrcp.f32 %v1511_v25  ;;  %v1524_v43 = vsel %vm457_vm3, %v3669_v51, 0.0  ;;  %v1938_v2 = vunpack.c.l.b16 %v1667_v20 }
 0x558   : >> { %v1648_v24 = vpack.c.bf16 %v1616_v44, %v1616_v44 }
 0x55a   : >> { %v1765_v60 = vunpack.c.l.b16 %v1648_v24 }
 0x55b   : >> { %v2940_v12 = vpop.eup %2939  ;;  %1525 = vadd.xlane.f32.xlu1 %v1524_v43 }
 0x55c   : >> { %v1514_v53 = vpop.xlane.xlu1 %1513  ;;  %v1772_v33 = vpack.c.b16 %v1765_v60, %v1764_v26  ;;  %v1636_v41 = vmul.f32 %v2940_v12, %v3576_v0  ;;  %v3675_v49 = vpop.eup %2941  ;;  %v3788_v60 = vld [vmem:[#allocation8_spill] sm:$0xff] }
 0x55d   : >> { %2945 = vrcp.f32 %v1514_v53  ;;  %v2944_v46 = vpop.eup %2943  ;;  %v1548_v6 = vsel %vm457_vm3, %v3675_v49, 0.0 }
 0x55e   : >> { %v3677_v63 = vpop.xlane.xlu2 %1522  ;;  %2496 = vmatmul.msk.bf16.vlgmr.msrb.gmra.mxu3 %vm457_vm3, %v1772_v33  ;;  %v1668_v47 = vpack.c.bf16 %v1636_v41, %v1636_v41  ;;  %2947 = vrcp.f32 %v1574_v9  ;;  %v1617_v0 = vmul.f32 %v2944_v46, %v3563_v23 }
 0x560   : >> { %v1939_v22 = vunpack.c.l.b16 %v1668_v47  ;;  %v1649_v1 = vpack.c.bf16 %v1617_v0, %v1617_v0 }
 0x562   : >> { %v1944_v11 = vpack.c.b16 %v1939_v22, %v1938_v2  ;;  %v1766_v38 = vunpack.c.l.b16 %v1649_v1  ;;  %v3790_v1 = vld [vmem:[#allocation9_spill] sm:$0xff] }
 0x563   : >> { %v2946_v31 = vpop.eup %2945  ;;  %1549 = vadd.xlane.f32.xlu1 %v1548_v6 }
 0x564   : >> { %2506 = vmatmul.msk.bf16.gmra.mxu1 %vm457_vm3, %v1944_v11  ;;  %v1517_v8 = vpop.xlane.xlu1 %1516  ;;  %v1618_v3 = vmul.f32 %v2946_v31, %v3590_v21  ;;  %v2948_v28 = vpop.eup %2947 }
 0x565   : >> { %v1638_v34 = vmul.f32 %v2948_v28, %v3494_v36 }
 0x566   : >> { %v1571_v58 = vpop.xlane.xlu2 %1570  ;;  %v1650_v55 = vpack.c.bf16 %v1618_v3, %v1618_v3 }
 0x567   : >> { %2949 = vrcp.f32 %v1571_v58  ;;  %v1670_v56 = vpack.c.bf16 %v1638_v34, %v1638_v34 }
 0x568   : >> { %v1767_v4 = vunpack.c.l.b16 %v1650_v55  ;;  %2951 = vrcp.f32 %v1517_v8 }
 0x569   : >> { %v1941_v61 = vunpack.c.l.b16 %v1670_v56  ;;  %v1906_v62 = vpop.f32.mrf.mxu0 }
 0x56a   : >> { %v1773_v45 = vpack.c.b16 %v1767_v4, %v1766_v38 }
 0x56c   : >> { %v1520_v35 = vpop.xlane.xlu1 %1519 }
 0x56d   : >> { %v2950_v23 = vpop.eup %2949  ;;  %2953 = vrcp.f32 %v1520_v35 }
 0x56e   : >> { %2497 = vmatmul.msk.bf16.gmra.mxu3 %vm457_vm3, %v1773_v45  ;;  %v1637_v59 = vmul.f32 %v2950_v23, %v3608_v42  ;;  %v2952_v21 = vpop.eup %2951  ;;  %2955 = vrcp.f32 %v3651_v10  ;;  %v3789_v10 = vld [vmem:[#allocation10_spill] sm:$0xff] }
 0x56f   : >> { %v1619_v17 = vmul.f32 %v2952_v21, %v3606_v16 }
 0x570   : >> { %v1669_v7 = vpack.c.bf16 %v1637_v59, %v1637_v59 }
 0x571   : >> { %v1651_v36 = vpack.c.bf16 %v1619_v17, %v1619_v17  ;;  %v1991_v42 = vpop.f32.mrf.mxu1  ;;  %v1908_v57 = vpop.f32.mrf.mxu0 }
 0x572   : >> { %v1940_v54 = vunpack.c.l.b16 %v1669_v7  ;;  %v2788_v14 = vpack.i.bf16 %v1991_v42, %v1906_v62 }
 0x573   : >> { %v2954_v40 = vpop.eup %2953  ;;  %v1768_v29 = vunpack.c.l.b16 %v1651_v36 }
 0x574   : >> { %v1945_v27 = vpack.c.b16 %v1941_v61, %v1940_v54  ;;  %v1620_v25 = vmul.f32 %v2954_v40, %v3787_v18  ;;  %v2956_v26 = vpop.eup %2955 }
 0x575   : >> { %v1613_v43 = vmul.f32 %v2956_v26, %v3788_v60 }
 0x576   : >> { %2507 = vmatmul.msk.bf16.gmra.mxu1 %vm457_vm3, %v1945_v27  ;;  %v1652_v5 = vpack.c.bf16 %v1620_v25, %v1620_v25 }
 0x577   : >> { %v1645_v41 = vpack.c.bf16 %v1613_v43, %v1613_v43 }
 0x578   : >> { %v1769_v19 = vunpack.c.l.b16 %v1652_v5 }
 0x579   : >> { %v1993_v32 = vpop.f32.mrf.mxu1  ;;  %v1685_v47 = vunpack.c.l.b16 %v1645_v41  ;;  %v2970_v41 = vld [vmem:[%s3136_s28 + $0x8] sm:$0xff] }
 0x57a   : >> { %v1774_v48 = vpack.c.b16 %v1769_v19, %v1768_v29  ;;  %v2790_v16 = vpack.i.bf16 %v1993_v32, %v1908_v57 }
 0x57e   : >> { %2498 = vmatmul.msk.bf16.gmra.mxu3 %vm457_vm3, %v1774_v48 }
 0x591   : >> { %v1911_v52 = vpop.f32.mrf.mxu0 }
 0x596   : >> { %v1736_v11 = vpop.f32.mrf.mxu2 }
 0x599   : >> { %v1913_v44 = vpop.f32.mrf.mxu0 }
 0x59d   : >> { %2789 = vxpose.xlu1.b32.start [1/8] (short) (narrow) %v2788_v14, 8 }
 0x59e   : >> { %v1738_v35 = vpop.f32.mrf.mxu2 }
 0x5a1   : >> { %v1996_v30 = vpop.f32.mrf.mxu1 }
 0x5a2   : >> { %v2792_v15 = vpack.i.bf16 %v1996_v30, %v1911_v52 }
 0x5a5   : >> { %2791 = vxpose.xlu1.b32.cont [2/8] (short) (narrow) %v2790_v16, 8 }
 0x5a9   : >> { %v1998_v37 = vpop.f32.mrf.mxu1 }
 0x5aa   : >> { %v2794_v24 = vpack.i.bf16 %v1998_v37, %v1913_v44 }
 0x5ad   : >> { %2793 = vxpose.xlu1.b32.cont [3/8] (short) (narrow) %v2792_v15, 8 }
 0x5b5   : >> { %2795 = vxpose.xlu1.b32.cont [4/8] (short) (narrow) %v2794_v24, 8 }
 0x5c1   : >> { %v1916_v4 = vpop.f32.mrf.mxu0 }
 0x5c6   : >> { %v1502_v13 = vpop.xlane.xlu1 %1501 }
 0x5c7   : >> { %2957 = vrcp.f32 %v1502_v13 }
 0x5c8   : >> { %2959 = vrcp.f32 %v3677_v63 }
 0x5c9   : >> { %v1918_v61 = vpop.f32.mrf.mxu0 }
 0x5cd   : >> { %v2958_v12 = vpop.eup %2957 }
 0x5ce   : >> { %v1526_v53 = vpop.xlane.xlu1 %1525  ;;  %v1614_v33 = vmul.f32 %v2958_v12, %v3661_v50  ;;  %v2960_v20 = vpop.eup %2959 }
 0x5cf   : >> { %2961 = vrcp.f32 %v1526_v53  ;;  %v1621_v2 = vmul.f32 %v2960_v20, %v3789_v10  ;;  %v3027_v53 = vmov 1   ;;  %v3029_v10 = vmov 5  }
 0x5d0   : >> { %v1646_v9 = vpack.c.bf16 %v1614_v33, %v1614_v33  ;;  %2963 = vrcp.f32 %v3667_v39  ;;  %2830 = vset.pattern.permute.xlu0 %v3027_v53  ;;  %v2969_v33 = vld [vmem:[%s3136_s28] sm:$0xff] }
 0x5d1   : >> { %v1653_v31 = vpack.c.bf16 %v1621_v2, %v1621_v2  ;;  %2142 = vperm.xlu0 %2830, %v2969_v33  }
 0x5d2   : >> { %v1686_v46 = vunpack.c.l.b16 %v1646_v9  ;;  %v2971_v9 = vld [vmem:[%s3136_s28 + $0x10] sm:$0xff] }
 0x5d3   : >> { %v1770_v3 = vunpack.c.l.b16 %v1653_v31 }
 0x5d4   : >> { %v1690_v22 = vpack.c.b16 %v1686_v46, %v1685_v47  ;;  %v2972_v47 = vld [vmem:[%s3136_s28 + $0x18] sm:$0xff]  ;;  %v3028_v46 = vmov 4  }
 0x5d5   : >> { %v2962_v6 = vpop.eup %2961 }
 0x5d6   : >> { %2495 = vmatmul.msk.bf16.gmra.mxu2 %vm457_vm3, %v1690_v22  ;;  %v1550_v63 = vpop.xlane.xlu1 %1549  ;;  %v1622_v0 = vmul.f32 %v2962_v6, %v3669_v51  ;;  %v2964_v50 = vpop.eup %2963 }
 0x5d7   : >> { %2965 = vrcp.f32 %v1550_v63  ;;  %v1629_v39 = vmul.f32 %v2964_v50, %v3790_v1  ;;  %v2543_v50 = vld [vmem:[%s3712_s13] sm:$0xff] }
 0x5d8   : >> { %v1654_v8 = vpack.c.bf16 %v1622_v0, %v1622_v0 }
 0x5d9   : >> { %v1661_v34 = vpack.c.bf16 %v1629_v39, %v1629_v39  ;;  %2146 = vperm.xlu0 %2830, %v2970_v41  }
 0x5da   : >> { %v1771_v58 = vunpack.c.l.b16 %v1654_v8  ;;  %v2544_v8 = vld [vmem:[%s3712_s13 + $0x8] sm:$0xff] }
 0x5db   : >> { %v1855_v21 = vunpack.c.l.b16 %v1661_v34 }
 0x5dc   : >> { %v1775_v55 = vpack.c.b16 %v1771_v58, %v1770_v3 }
 0x5dd   : >> { %v2966_v28 = vpop.eup %2965 }
 0x5de   : >> { %2499 = vmatmul.msk.bf16.gmra.mxu3 %vm457_vm3, %v1775_v55  ;;  %v1630_v38 = vmul.f32 %v2966_v28, %v3675_v49  ;;  %v1741_v49 = vpop.f32.mrf.mxu2  ;;  %v3791_v28 = vld [vmem:[#allocation5_spill] sm:$0xff] }
 0x5e0   : >> { %v1662_v45 = vpack.c.bf16 %v1630_v38, %v1630_v38  ;;  %v3792_v38 = vld [vmem:[#allocation4_spill] sm:$0xff] }
 0x5e1   : >> { %v1821_v23 = vpop.f32.mrf.mxu3  ;;  %v2001_v51 = vpop.f32.mrf.mxu1  ;;  %2150 = vperm.xlu0 %2830, %v2971_v9  }
 0x5e2   : >> { %v2809_v59 = vpack.i.bf16 %v1821_v23, %v1736_v11  ;;  %v2796_v56 = vpack.i.bf16 %v2001_v51, %v1916_v4  ;;  %v1856_v7 = vunpack.c.l.b16 %v1662_v45  ;;  %v3793_v45 = vld [vmem:[#allocation3_spill] sm:$0xff] }
 0x5e4   : >> { %2810 = vxpose.xlu2.b32.start [1/8] (short) (narrow) %v2809_v59, 8  ;;  %2797 = vxpose.xlu1.b32.cont [5/8] (short) (narrow) %v2796_v56, 8  ;;  %v1860_v54 = vpack.c.b16 %v1856_v7, %v1855_v21 }
 0x5e6   : >> { %2503 = vmatmul.msk.bf16.gmra.mxu0 %vm457_vm3, %v1860_v54  ;;  %v1743_v5 = vpop.f32.mrf.mxu2  ;;  %v3794_v54 = vld [vmem:[#allocation2_spill] sm:$0xff] }
 0x5e9   : >> { %v1823_v17 = vpop.f32.mrf.mxu3  ;;  %v2003_v40 = vpop.f32.mrf.mxu1  ;;  %2154 = vperm.xlu0 %2830, %v2972_v47  }
 0x5ea   : >> { %v2811_v27 = vpack.i.bf16 %v1823_v17, %v1738_v35  ;;  %v2798_v18 = vpack.i.bf16 %v2003_v40, %v1918_v61 }
 0x5ec   : >> { %2812 = vxpose.xlu2.b32.cont [2/8] (short) (narrow) %v2811_v27, 8  ;;  %2799 = vxpose.xlu1.b32.cont [6/8] (short) (narrow) %v2798_v18, 8 }
 0x5ee   : >> { %v1746_v48 = vpop.f32.mrf.mxu2 }
 0x5f1   : >> { %v1826_v25 = vpop.f32.mrf.mxu3  ;;  %2831 = vset.pattern.permute.xlu0 %v3028_v46 }
 0x5f2   : >> { %v2813_v36 = vpack.i.bf16 %v1826_v25, %v1741_v49  ;;  %2260 = vperm.xlu0 %2831, %v2971_v9  }
 0x5f3   : >> { %v2006_v30 = vpop.f32.mrf.mxu1 }
 0x5f4   : >> { %2814 = vxpose.xlu2.b32.cont [3/8] (short) (narrow) %v2813_v36, 8 }
 0x5f6   : >> { %v1748_v14 = vpop.f32.mrf.mxu2 }
 0x5f9   : >> { %v1828_v19 = vpop.f32.mrf.mxu3 }
 0x5fa   : >> { %v2815_v29 = vpack.i.bf16 %v1828_v19, %v1743_v5  ;;  %2264 = vperm.xlu0 %2831, %v2972_v47  }
 0x5fb   : >> { %v2008_v60 = vpop.f32.mrf.mxu1 }
 0x5fc   : >> { %2816 = vxpose.xlu2.b32.cont [4/8] (short) (narrow) %v2815_v29, 8 }
 0x601   : >> { %v1831_v42 = vpop.f32.mrf.mxu3 }
 0x602   : >> { %v2817_v62 = vpack.i.bf16 %v1831_v42, %v1746_v48  ;;  %2252 = vperm.xlu0 %2831, %v2969_v33  }
 0x604   : >> { %2818 = vxpose.xlu2.b32.cont [5/8] (short) (narrow) %v2817_v62, 8 }
 0x609   : >> { %v1833_v32 = vpop.f32.mrf.mxu3 }
 0x60a   : >> { %v2819_v57 = vpack.i.bf16 %v1833_v32, %v1748_v14  ;;  %2833 = vset.pattern.permute.xlu0 %v3029_v10  ;;  %v3795_v32 = vld [vmem:[#allocation6_spill] sm:$0xff] }
 0x60b   : >> { %2280 = vperm.xlu0 %2833, %v2971_v9  }
 0x60c   : >> { %2820 = vxpose.xlu2.b32.cont [6/8] (short) (narrow) %v2819_v57, 8 }
 0x613   : >> { %2272 = vperm.xlu0 %2833, %v2969_v33  }
 0x61b   : >> { %2276 = vperm.xlu0 %2833, %v2970_v41  }
 0x643   : >> { %v2143_v3 = vpop.permute.xlu0 %2142 }
 0x644   : >> { %v2157_v4 = vadd.f32 %v3791_v28, %v2143_v3 }
 0x64b   : >> { %v2147_v58 = vpop.permute.xlu0 %2146 }
 0x64c   : >> { %v2158_v34 = vadd.f32 %v3792_v38, %v2147_v58 }
 0x653   : >> { %v2151_v55 = vpop.permute.xlu0 %2150 }
 0x654   : >> { %v2159_v23 = vadd.f32 %v3793_v45, %v2151_v55 }
 0x659   : >> { %v1751_v16 = vpop.f32.mrf.mxu2 }
 0x65b   : >> { %v2155_v21 = vpop.permute.xlu0 %2154 }
 0x65c   : >> { %v2160_v61 = vadd.f32 %v3794_v54, %v2155_v21 }
 0x661   : >> { %v1836_v52 = vpop.f32.mrf.mxu3  ;;  %v1753_v24 = vpop.f32.mrf.mxu2 }
 0x662   : >> { %v2821_v15 = vpack.i.bf16 %v1836_v52, %v1751_v16 }
 0x663   : >> { %v1921_v37 = vpop.f32.mrf.mxu0 }
 0x664   : >> { %v2800_v44 = vpack.i.bf16 %v2006_v30, %v1921_v37  ;;  %2822 = vxpose.xlu2.b32.cont [7/8] (short) (narrow) %v2821_v15, 8  ;;  %v2261_v30 = vpop.permute.xlu0 %2260 }
 0x666   : >> { %2801 = vxpose.xlu1.b32.cont [7/8] (short) (narrow) %v2800_v44, 8 }
 0x669   : >> { %v1838_v13 = vpop.f32.mrf.mxu3 }
 0x66a   : >> { %v2823_v26 = vpack.i.bf16 %v1838_v13, %v1753_v24 }
 0x66b   : >> { %v1923_v43 = vpop.f32.mrf.mxu0 }
 0x66c   : >> { %v2802_v12 = vpack.i.bf16 %v2008_v60, %v1923_v43  ;;  %2824 = vxpose.xlu2.b32.end [8/8] (short) (narrow) %v2823_v26, 8  ;;  %v2265_v9 = vpop.permute.xlu0 %2264 }
 0x66e   : >> { %2803 = vxpose.xlu1.b32.end [8/8] (short) (narrow) %v2802_v12, 8 }
 0x6c1   : >> { %2834 = vset.pattern.permute.xlu1 %v3028_v46 }
 0x6c8   : >> { %2256 = vperm.xlu1 %2834, %v2970_v41  }
 0x6cd   : >> { %v2825_v20 = vpop.trf.xlu2 }
 0x6ce   : >> { %2832 = vset.pattern.permute.xlu2 %v3029_v10  ;;  %v2829_v22 = vunpack.i.h.bf16 %v2825_v20  ;;  %v2826_v6 = vunpack.i.l.bf16 %v2825_v20 }
 0x6d0   : >> { %v2139_v31 = vpack.c.bf16 %v2829_v22, %v2826_v6  ;;  %v2253_v6 = vpop.permute.xlu0 %2252 }
 0x6d5   : >> { %2284 = vperm.xlu2 %2832, %v2972_v47  }
 0x6da   : >> { %v2804_v2 = vpop.trf.xlu1 }
 0x6db   : >> { %v2808_v11 = vunpack.i.h.bf16 %v2804_v2  ;;  %v2805_v63 = vunpack.i.l.bf16 %v2804_v2 }
 0x6dd   : >> { %v2140_v0 = vpack.c.bf16 %v2808_v11, %v2805_v63 }
 0x6df   : >> { %2183 = vmatpush.bf16.msrb.mxu2 %v2140_v0 }
 0x6e3   : >> { %2184 = vmatpush.bf16.msrb.mxu2 %v2139_v31  ;;  %v2281_v31 = vpop.permute.xlu0 %2280 }
 0x6e6   : >> { %2516 = vmatmul.msk.bf16.vlgmr.msrb.gmra.mxu2 %vm357_vm2, %v2543_v50 }
 0x6f6   : >> { %2517 = vmatmul.msk.bf16.gmra.mxu2 %vm357_vm2, %v2544_v8 }
 0x769   : >> { %v2186_v1 = vpop.f32.mrf.mxu2 }
 0x76a   : >> { %v2196_v59 = vadd.f32 %v2186_v1, %v2157_v4  ;;  %v2257_v4 = vpop.permute.xlu1 %2256 }
 0x76c   : >> { %v2200_v17 = vsel %vm457_vm3, %v2196_v59, 0.0 }
 0x771   : >> { %v2188_v39 = vpop.f32.mrf.mxu2 }
 0x772   : >> { %v2197_v51 = vadd.f32 %v2188_v39, %v2158_v34  ;;  %v2273_v39 = vpop.permute.xlu0 %2272 }
 0x774   : >> { %v2201_v7 = vsel %vm457_vm3, %v2197_v51, 0.0 }
 0x775   : >> { %v2202_v27 = vadd.f32 %v2201_v7, %v2200_v17 }
 0x779   : >> { %v2191_v35 = vpop.f32.mrf.mxu2 }
 0x77a   : >> { %v2198_v56 = vadd.f32 %v2191_v35, %v2159_v23  ;;  %v2285_v23 = vpop.permute.xlu2 %2284 }
 0x77c   : >> { %v2203_v40 = vsel %vm457_vm3, %v2198_v56, 0.0 }
 0x77d   : >> { %v2204_v25 = vadd.f32 %v2203_v40, %v2202_v27 }
 0x781   : >> { %v2193_v18 = vpop.f32.mrf.mxu2 }
 0x782   : >> { %v2199_v49 = vadd.f32 %v2193_v18, %v2160_v61  ;;  %v2277_v61 = vpop.permute.xlu0 %2276 }
 0x784   : >> { %v2205_v36 = vsel %vm457_vm3, %v2199_v49, 0.0 }
 0x785   : >> { %v2206_v5 = vadd.f32 %v2205_v36, %v2204_v25  ;;  %v2546_v25 = vld [vmem:[%s3712_s13 + $0x18] sm:$0xff] }
 0x787   : >> { %v2207_v19 = vrot.slane %v2206_v5, 4 }
 0x789   : >> { %v2208_v29 = vadd.f32 %v2207_v19, %v2206_v5 }
 0x78b   : >> { %v2209_v48 = vrot.slane %v2208_v29, 2 }
 0x78d   : >> { %v2210_v42 = vadd.f32 %v2209_v48, %v2208_v29 }
 0x78f   : >> { %v2211_v62 = vrot.slane %v2210_v42, 1 }
 0x791   : >> { %v2212_v14 = vadd.f32 %v2211_v62, %v2210_v42 }
 0x793   : >> { %v2213_v57 = vmul.f32 %v2212_v14, %v3795_v32 }
 0x795   : >> { %v2217_v16 = vsub.f32 %v2199_v49, %v2213_v57  ;;  %v2214_v52 = vsub.f32 %v2196_v59, %v2213_v57  ;;  %v2215_v15 = vsub.f32 %v2197_v51, %v2213_v57  ;;  %v2216_v37 = vsub.f32 %v2198_v56, %v2213_v57  ;;  %v2545_v49 = vld [vmem:[%s3712_s13 + $0x10] sm:$0xff] }
 0x797   : >> { %v2218_v44 = vmul.f32 %v2214_v52, %v2214_v52  ;;  %v2219_v24 = vmul.f32 %v2215_v15, %v2215_v15  ;;  %v2220_v13 = vmul.f32 %v2216_v37, %v2216_v37  ;;  %v2221_v26 = vmul.f32 %v2217_v16, %v2217_v16 }
 0x799   : >> { %v2222_v60 = vsel %vm457_vm3, %v2218_v44, 0.0  ;;  %v2223_v43 = vsel %vm457_vm3, %v2219_v24, 0.0  ;;  %v2225_v53 = vsel %vm457_vm3, %v2220_v13, 0.0  ;;  %v2227_v41 = vsel %vm457_vm3, %v2221_v26, 0.0 }
 0x79a   : >> { %v2224_v12 = vadd.f32 %v2223_v43, %v2222_v60 }
 0x79c   : >> { %v2226_v33 = vadd.f32 %v2225_v53, %v2224_v12 }
 0x79e   : >> { %v2228_v20 = vadd.f32 %v2227_v41, %v2226_v33 }
 0x7a0   : >> { %v2229_v47 = vrot.slane %v2228_v20, 4 }
 0x7a2   : >> { %v2230_v46 = vadd.f32 %v2229_v47, %v2228_v20 }
 0x7a4   : >> { %v2231_v10 = vrot.slane %v2230_v46, 2 }
 0x7a6   : >> { %v2232_v2 = vadd.f32 %v2231_v10, %v2230_v46 }
 0x7a8   : >> { %v2233_v22 = vrot.slane %v2232_v2, 1 }
 0x7aa   : >> { %v2234_v11 = vadd.f32 %v2233_v22, %v2232_v2 }
 0x7ac   : >> { %v2235_v63 = vmul.f32 %v2234_v11, %v3795_v32 }
 0x7ae   : >> { %v2236_v0 = vadd.f32 1e-05, %v2235_v63 }
 0x7b0   : >> { %2967 = vrsqrt.f32 %v2236_v0  ;;  %vm2243_vm11 = vweird.f32 %v2236_v0 }
 0x7b6   : >> { %v2968_v50 = vpop.eup %2967 }
 0x7b7   : >> { %v2238_v8 = vmul.f32 %v2968_v50, %v2236_v0  ;;  %vm2244_vm10 = vweird.f32 %v2968_v50 }
 0x7b8   : >> { %vm2245_vm12 = vmor %vm2243_vm11, %vm2244_vm10 }
 0x7b9   : >> { %v2239_v3 = vmul.f32 %v2968_v50, %v2238_v8 }
 0x7bb   : >> { %v2240_v58 = vmul.f32 0.5, %v2239_v3 }
 0x7bd   : >> { %v2241_v1 = vsub.f32 1.5, %v2240_v58 }
 0x7bf   : >> { %v2242_v55 = vmul.f32 %v2968_v50, %v2241_v1 }
 0x7c1   : >> { %v2246_v28 = vsel %vm2245_vm12, %v2968_v50, %v2242_v55 }
 0x7c2   : >> { %v2249_v38 = vmul.f32 %v2246_v28, %v2216_v37  ;;  %v2250_v34 = vmul.f32 %v2246_v28, %v2217_v16  ;;  %v2247_v35 = vmul.f32 %v2246_v28, %v2214_v52  ;;  %v2248_v45 = vmul.f32 %v2246_v28, %v2215_v15 }
 0x7c4   : >> { %v2269_v51 = vmul.f32 %v2261_v30, %v2249_v38  ;;  %v2270_v59 = vmul.f32 %v2265_v9, %v2250_v34  ;;  %v2267_v56 = vmul.f32 %v2253_v6, %v2247_v35  ;;  %v2268_v21 = vmul.f32 %v2257_v4, %v2248_v45 }
 0x7c6   : >> { %v2289_v7 = vadd.f32 %v2281_v31, %v2269_v51  ;;  %v2290_v54 = vadd.f32 %v2285_v23, %v2270_v59  ;;  %v2287_v17 = vadd.f32 %v2273_v39, %v2267_v56  ;;  %v2288_v40 = vadd.f32 %v2277_v61, %v2268_v21 }
 0x7c8   : >> { %v2292_v27 = vpack.c.bf16 %v2290_v54, %v2289_v7  ;;  %v2291_v18 = vpack.c.bf16 %v2288_v40, %v2287_v17 }
 0x7ca   : >> { %2315 = vmatpush.bf16.msra.mxu3 %v2292_v27 }
 0x7ce   : >> { %2316 = vmatpush.bf16.msra.mxu3 %v2291_v18 }
 0x7d1   : >> { %2526 = vmatmul.msk.bf16.vlgmr.msra.gmra.mxu3 %vm357_vm2, %v2545_v49 }
 0x7e1   : >> { %2527 = vmatmul.msk.bf16.gmra.mxu3 %vm357_vm2, %v2546_v25 }
 0x854   : >> { %v2318_v36 = vpop.f32.mrf.mxu3 }
 0x855   : >> { %v2319_v5 = vadd.f32 %v2318_v36, %v2287_v17  }
 0x857   : >> { %v3799_v50 = vmov %v2319_v5  ;;  %2329 = vst.msk [vmem:[%s3085_s10] sm:$0xff] (%p409_p4), %vm457_vm3, %v2319_v5 }
 0x85c   : >> { %v2320_v19 = vpop.f32.mrf.mxu3 }
 0x85d   : >> { %v2321_v29 = vadd.f32 %v2320_v19, %v2288_v40  }
 0x85f   : >> { %v3798_v58 = vmov %v2321_v29  ;;  %2330 = vst.msk [vmem:[%s3085_s10 + $0x8] sm:$0xff] (%p409_p4), %vm457_vm3, %v2321_v29 }
 0x864   : >> { %v2323_v48 = vpop.f32.mrf.mxu3 }
 0x865   : >> { %v2324_v42 = vadd.f32 %v2323_v48, %v2289_v7  }
 0x867   : >> { %v3797_v55 = vmov %v2324_v42  ;;  %2331 = vst.msk [vmem:[%s3085_s10 + $0x10] sm:$0xff] (%p409_p4), %vm457_vm3, %v2324_v42 }
 0x86b   : > { %411 = sbr.rel (!%p409_p4) target bundleno = 326 (0x146), region = 85 }
 0x86c   : >> { %v2325_v62 = vpop.f32.mrf.mxu3 }
 0x86d   : >> { %v2326_v14 = vadd.f32 %v2325_v62, %v2290_v54  }
 0x86f   : >> { %v3796_v62 = vmov %v2326_v14  ;;  %2332 = vst.msk [vmem:[%s3085_s10 + $0x18] sm:$0xff] (%p409_p4), %vm457_vm3, %v2326_v14 }
 0x870 PF: > { %s16_s21 = sadd.s32 1, %s2999_s21  }
 0x871   : > { %p13_p5 = scmp.ge.s32.totalorder %s16_s21, 4  }
 0x873   :  { %15 = sbr.rel (!%p13_p5) target bundleno = 1 (0x1), region = 96 }

</bundles_post_ra>
